<compile_context>
chip_gen: v5e
topology: v5e:2x2
jax: 0.10.0
libtpu: 0.0.40
codegen_flags: <defaults>
</compile_context>

<pallas_src>
import math

import jax
import jax.numpy as jnp
from jax.experimental import pallas as pl
from jax.experimental.pallas import tpu as pltpu


# ----------------------------------------------------------------------------
# Pallas kernel factory
# ----------------------------------------------------------------------------
def _make_kernel(Bb, L, DM, NS, TC):
    """Bb: batch per grid step, L: padded seq len, DM: d_inner, NS: d_state,
    TC: timestep chunk size (multiple of 8 sublanes)."""
    assert L % TC == 0
    nchunks = L // TC
    BC = 2 * NS

    def kernel(x1_ref, x2_ref, w1_ref, w2_ref, bias1_ref, bias2_ref,
               a1_ref, a2_ref, dp1_ref, dp2_ref, g1_ref, b1_ref, g2_ref, b2_ref,
               y1_ref, y2_ref,
               d1_s, d2_s, bc1_s, bc2_s):
        # ------------------------------------------------------------------
        # Stage 1: fused projection.  dt_proj is pre-composed into the x_proj
        # weight (wrapper), so each branch is ONE MXU matmul producing
        # [delta_pre | B | C] for all Bb*L rows at once.
        # ------------------------------------------------------------------
        def pre(x_ref, w_ref, bias_ref, d_s, bc_s):
            x2d = x_ref[...].reshape(Bb * L, DM)
            proj = jnp.dot(x2d, w_ref[...], preferred_element_type=jnp.float32)
            d_s[...] = jax.nn.softplus(
                proj[:, :DM] + bias_ref[...]).reshape(Bb, L, DM)
            bc_s[...] = proj[:, DM:DM + BC].reshape(Bb, L, BC)

        pre(x1_ref, w1_ref, bias1_ref, d1_s, bc1_s)
        pre(x2_ref, w2_ref, bias2_ref, d2_s, bc2_s)

        # Hoisted parameter loads (broadcasts are not re-emitted inside loops).
        a1 = a1_ref[...]            # (NS, DM) holding -exp(A_log)^T
        a2 = a2_ref[...]
        dp1 = dp1_ref[...]          # (1, DM) D skip
        dp2 = dp2_ref[...]
        g1 = g1_ref[...]; b1 = b1_ref[...]
        g2 = g2_ref[...]; b2 = b2_ref[...]

        def layernorm(z, g, b):
            m = jnp.mean(z, axis=-1, keepdims=True)
            v = jnp.mean(jnp.square(z - m), axis=-1, keepdims=True)
            return (z - m) * jax.lax.rsqrt(v + 1e-5) * g + b

        # ------------------------------------------------------------------
        # Stage 2: selective scan.  A single chunked loop over L carrying a
        # fused (Bb, NS, DM) state per branch; both modality scans run
        # interleaved inside the statically-unrolled chunk body.
        # ------------------------------------------------------------------
        def chunk(c, carry):
            st1, st2 = carry
            off = c * TC
            if not isinstance(off, int):
                off = pl.multiple_of(off, TC)

            x1c = x1_ref[:, pl.ds(off, TC), :]       # (Bb, TC, DM)
            x2c = x2_ref[:, pl.ds(off, TC), :]
            d1c = d1_s[:, pl.ds(off, TC), :]
            d2c = d2_s[:, pl.ds(off, TC), :]
            bc1c = bc1_s[:, pl.ds(off, TC), :]       # (Bb, TC, 2*NS)
            bc2c = bc2_s[:, pl.ds(off, TC), :]
            B1c, C1c = bc1c[..., :NS], bc1c[..., NS:]
            B2c, C2c = bc2c[..., :NS], bc2c[..., NS:]

            # Whole-chunk dA / dBu precompute: exp (EUP) + bulk VPU work kept
            # off the serial recurrence critical path.
            dA1 = jnp.exp(d1c[:, :, None, :] * a1[None, None])     # (Bb,TC,NS,DM)
            dA2 = jnp.exp(d2c[:, :, None, :] * a2[None, None])
            dBu1 = (d1c * x1c)[:, :, None, :] * B1c[..., None]
            dBu2 = (d2c * x2c)[:, :, None, :] * B2c[..., None]

            y1_rows = []
            y2_rows = []
            for t in range(TC):                      # static unroll over chunk
                st1 = dA1[:, t] * st1 + dBu1[:, t]   # (Bb, NS, DM)
                st2 = dA2[:, t] * st2 + dBu2[:, t]
                # Cross-modal readout: branch 1 uses C from branch 2, & v.v.
                y1_rows.append(
                    jnp.sum(C2c[:, t, :, None] * st1, axis=1)[:, None, :])
                y2_rows.append(
                    jnp.sum(C1c[:, t, :, None] * st2, axis=1)[:, None, :])
            y1c = jnp.concatenate(y1_rows, axis=1)   # (Bb, TC, DM)
            y2c = jnp.concatenate(y2_rows, axis=1)

            # D-skip + LayerNorm (per row over DM) and ONE dense store/branch.
            y1_ref[:, pl.ds(off, TC), :] = layernorm(y1c + x1c * dp1, g1, b1)
            y2_ref[:, pl.ds(off, TC), :] = layernorm(y2c + x2c * dp2, g2, b2)
            return st1, st2

        init = (jnp.zeros((Bb, NS, DM), jnp.float32),
                jnp.zeros((Bb, NS, DM), jnp.float32))
        if nchunks <= 4:
            carry = init
            for c in range(nchunks):                 # fully static offsets
                carry = chunk(c, carry)
        else:
            # TODO(synk): for very large L, lift this onto an "arbitrary" grid
            # axis with the state carried in VMEM scratch (keeps footprint
            # O(TC*DM) and fits v7x's 64 MiB VMEM).
            jax.lax.fori_loop(0, nchunks, chunk, init)

    return kernel


# ----------------------------------------------------------------------------
# Wrapper
# ----------------------------------------------------------------------------
def cross_modal_mamba(x_rgb, x_e, p, batch_block=None):
    """x_rgb, x_e: (B, d_inner, L) float32 -> (y_rgb, y_e) each (B, L, d_inner)."""
    Bsz, DM, L = x_rgb.shape
    RK = p["wdt1T"].shape[0]
    NS = p["a1"].shape[0]
    BC = 2 * NS

    # Pre-compose dt_proj into x_proj:  delta_pre = x @ (Wx[:, :RK] @ Wdt),
    # so the kernel never runs a K=dt_rank matmul.
    def fuse(wxT, wdtT):
        return jnp.concatenate([wxT[:, :RK] @ wdtT, wxT[:, RK:]], axis=1)

    w1 = fuse(p["wx1T"], p["wdt1T"]).astype(jnp.float32)   # (DM, DM + 2*NS)
    w2 = fuse(p["wx2T"], p["wdt2T"]).astype(jnp.float32)

    xr = jnp.swapaxes(x_rgb, 1, 2).astype(jnp.float32)     # (B, L, DM)
    xe = jnp.swapaxes(x_e, 1, 2).astype(jnp.float32)

    TC = 8                                                  # sublane chunk
    Lp = ((L + TC - 1) // TC) * TC
    if Lp != L:
        pad = ((0, 0), (0, Lp - L), (0, 0))                 # causal: safe to pad tail
        xr = jnp.pad(xr, pad)
        xe = jnp.pad(xe, pad)

    if batch_block is None:
        batch_block = next(bb for bb in (4, 2, 1) if Bsz % bb == 0)
    Bb = batch_block
    assert Bsz % Bb == 0

    kernel = _make_kernel(Bb, Lp, DM, NS, TC)

    def full_spec(shape):
        return pl.BlockSpec(shape, lambda i, _n=len(shape): (0,) * _n)

    x_spec = pl.BlockSpec((Bb, Lp, DM), lambda i: (i, 0, 0))
    out_spec = pl.BlockSpec((Bb, Lp, DM), lambda i: (i, 0, 0))

    in_specs = [
        x_spec, x_spec,
        full_spec((DM, DM + BC)), full_spec((DM, DM + BC)),
        full_spec((1, DM)), full_spec((1, DM)),
        full_spec((NS, DM)), full_spec((NS, DM)),
        full_spec((1, DM)), full_spec((1, DM)),
        full_spec((1, DM)), full_spec((1, DM)),
        full_spec((1, DM)), full_spec((1, DM)),
    ]

    grid_spec = pltpu.PrefetchScalarGridSpec(
        num_scalar_prefetch=0,
        grid=(Bsz // Bb,),
        in_specs=in_specs,
        out_specs=[out_spec, out_spec],
        scratch_shapes=[
            pltpu.VMEM((Bb, Lp, DM), jnp.float32),   # delta, branch 1
            pltpu.VMEM((Bb, Lp, DM), jnp.float32),   # delta, branch 2
            pltpu.VMEM((Bb, Lp, BC), jnp.float32),   # [B | C], branch 1
            pltpu.VMEM((Bb, Lp, BC), jnp.float32),   # [B | C], branch 2
        ],
    )

    y_rgb, y_e = pl.pallas_call(
        kernel,
        out_shape=(jax.ShapeDtypeStruct((Bsz, Lp, DM), jnp.float32),
                   jax.ShapeDtypeStruct((Bsz, Lp, DM), jnp.float32)),
        grid_spec=grid_spec,
        compiler_params=pltpu.CompilerParams(dimension_semantics=("parallel",)),
    )(xr, xe, w1, w2,
      p["bias1"], p["bias2"], p["a1"], p["a2"],
      p["D1"], p["D2"], p["g1"], p["b1"], p["g2"], p["b2"])

    if Lp != L:
        y_rgb = y_rgb[:, :L, :]
        y_e = y_e[:, :L, :]
    return y_rgb, y_e


# ----------------------------------------------------------------------------
# Deterministic parameter init (mirrors the PyTorch __init__ shapes/semantics)
# ----------------------------------------------------------------------------
def init_params(key, d_model=32, d_state=4, ssm_ratio=1,
                dt_min=0.001, dt_max=0.1, dt_init_floor=1e-4):
    d_inner = int(ssm_ratio * d_model)
    dt_rank = math.ceil(d_model / 16)
    r2 = dt_rank + 2 * d_state
    ks = jax.random.split(key, 8)

    def xproj(k):
        bound = 1.0 / math.sqrt(d_inner)
        w = jax.random.uniform(k, (r2, d_inner), jnp.float32, -bound, bound)
        return w.T                                    # pre-transposed (d_inner, r2)

    def dtproj(kw, kb):
        std = dt_rank ** (-0.5)
        w = jax.random.uniform(kw, (d_inner, dt_rank), jnp.float32, -std, std)
        dt = jnp.exp(jax.random.uniform(kb, (d_inner,), jnp.float32)
                     * (math.log(dt_max) - math.log(dt_min)) + math.log(dt_min))
        dt = jnp.maximum(dt, dt_init_floor)
        inv_dt = dt + jnp.log(-jnp.expm1(-dt))
        return w.T, inv_dt.reshape(1, d_inner)        # (dt_rank, d_inner), (1, d_inner)

    wdt1T, bias1 = dtproj(ks[2], ks[3])
    wdt2T, bias2 = dtproj(ks[4], ks[5])

    # A_log = log(arange(1..d_state)) broadcast to (d_inner, d_state);
    # the kernel consumes A = -exp(A_log), pre-transposed to (d_state, d_inner).
    a_negT = -jnp.broadcast_to(
        jnp.arange(1, d_state + 1, dtype=jnp.float32)[:, None],
        (d_state, d_inner))

    ones = jnp.ones((1, d_inner), jnp.float32)
    zeros = jnp.zeros((1, d_inner), jnp.float32)
    return dict(
        wx1T=xproj(ks[0]), wx2T=xproj(ks[1]),
        wdt1T=wdt1T, wdt2T=wdt2T, bias1=bias1, bias2=bias2,
        a1=a_negT, a2=a_negT,
        D1=ones, D2=ones,
        g1=ones, b1=zeros, g2=ones, b2=zeros,
    )


# ----------------------------------------------------------------------------
# Pure-JAX reference (same math, for verification)
# ----------------------------------------------------------------------------
def reference_forward(x_rgb, x_e, p):
    RK = p["wdt1T"].shape[0]
    NS = p["a1"].shape[0]
    DM = x_rgb.shape[1]

    def pre(x, wxT, wdtT, bias):
        xt = jnp.swapaxes(x, 1, 2)                     # (B, L, DM)
        x_dbl = xt @ wxT
        dtr = x_dbl[..., :RK]
        Bm = x_dbl[..., RK:RK + NS]
        Cm = x_dbl[..., RK + NS:RK + 2 * NS]
        delta = jax.nn.softplus(dtr @ wdtT + bias)
        return xt, delta, Bm, Cm

    def scan(xt, delta, Bm, C_other, a_negT, Dp):
        dA = jnp.exp(jnp.einsum("bld,nd->bldn", delta, a_negT))
        dBu = jnp.einsum("bld,bln->bldn", delta * xt, Bm)

        def step(state, inp):
            dA_t, dBu_t, c_t = inp
            state = dA_t * state + dBu_t               # (B, DM, NS)
            return state, jnp.einsum("bdn,bn->bd", state, c_t)

        xs = (jnp.swapaxes(dA, 0, 1), jnp.swapaxes(dBu, 0, 1),
              jnp.swapaxes(C_other, 0, 1))
        _, ys = jax.lax.scan(step, jnp.zeros((xt.shape[0], DM, NS)), xs)
        return jnp.swapaxes(ys, 0, 1) + xt * Dp

    def layernorm(y, g, b):
        m = y.mean(-1, keepdims=True)
        v = ((y - m) ** 2).mean(-1, keepdims=True)
        return (y - m) / jnp.sqrt(v + 1e-5) * g + b

    xt1, d1, B1, C1 = pre(x_rgb, p["wx1T"], p["wdt1T"], p["bias1"])
    xt2, d2, B2, C2 = pre(x_e, p["wx2T"], p["wdt2T"], p["bias2"])
    y1 = layernorm(scan(xt1, d1, B1, C2, p["a1"], p["D1"]), p["g1"], p["b1"])
    y2 = layernorm(scan(xt2, d2, B2, C1, p["a2"], p["D2"]), p["g2"], p["b2"])
    return y1, y2


# ----------------------------------------------------------------------------
if __name__ == "__main__":
    key = jax.random.PRNGKey(0)
    kp, k1, k2 = jax.random.split(key, 3)

    B, d_model, L = 2, 32, 8
    params = init_params(kp, d_model=d_model, d_state=4, ssm_ratio=1)

    x_rgb = jax.random.normal(k1, (B, d_model, L), jnp.float32)
    x_e = jax.random.normal(k2, (B, d_model, L), jnp.float32)

    y_rgb, y_e = cross_modal_mamba(x_rgb, x_e, params)
    jax.block_until_ready((y_rgb, y_e))

    r_rgb, r_e = reference_forward(x_rgb, x_e, params)
    assert y_rgb.shape == (B, L, d_model) and y_e.shape == (B, L, d_model)
    assert jnp.allclose(y_rgb, r_rgb, atol=1e-3, rtol=1e-3), "rgb branch mismatch"
    assert jnp.allclose(y_e, r_e, atol=1e-3, rtol=1e-3), "e branch mismatch"

    print("KERNEL_OK")
</pallas_src>

<mosaic_0001>
module attributes {stable_mosaic.version = 11 : i64} {
  func.func @kernel(%arg0: i32, %arg1: memref<2x8x32xf32, #tpu.memory_space<vmem>>, %arg2: memref<2x8x32xf32, #tpu.memory_space<vmem>>, %arg3: memref<32x40xf32, #tpu.memory_space<vmem>>, %arg4: memref<32x40xf32, #tpu.memory_space<vmem>>, %arg5: memref<1x32xf32, #tpu.memory_space<vmem>>, %arg6: memref<1x32xf32, #tpu.memory_space<vmem>>, %arg7: memref<4x32xf32, #tpu.memory_space<vmem>>, %arg8: memref<4x32xf32, #tpu.memory_space<vmem>>, %arg9: memref<1x32xf32, #tpu.memory_space<vmem>>, %arg10: memref<1x32xf32, #tpu.memory_space<vmem>>, %arg11: memref<1x32xf32, #tpu.memory_space<vmem>>, %arg12: memref<1x32xf32, #tpu.memory_space<vmem>>, %arg13: memref<1x32xf32, #tpu.memory_space<vmem>>, %arg14: memref<1x32xf32, #tpu.memory_space<vmem>>, %arg15: memref<2x8x32xf32, #tpu.memory_space<vmem>>, %arg16: memref<2x8x32xf32, #tpu.memory_space<vmem>>, %arg17: memref<2x8x32xf32, #tpu.memory_space<vmem>>, %arg18: memref<2x8x32xf32, #tpu.memory_space<vmem>>, %arg19: memref<2x8x8xf32, #tpu.memory_space<vmem>>, %arg20: memref<2x8x8xf32, #tpu.memory_space<vmem>>) attributes {dimension_semantics = [#tpu.dimension_semantics<parallel>], iteration_bounds = array<i64: 1>, scalar_prefetch = 0 : i64, scratch_operands = 4 : i64, tpu.core_type = #tpu.core_type<tc>, window_params = [{transform_indices = @transform_0, window_bounds = array<i64: 2, 8, 32>}, {transform_indices = @transform_1, window_bounds = array<i64: 2, 8, 32>}, {pipeline_mode = #tpu.pipeline_mode<synchronous>, transform_indices = @transform_2, window_bounds = array<i64: 32, 40>}, {pipeline_mode = #tpu.pipeline_mode<synchronous>, transform_indices = @transform_3, window_bounds = array<i64: 32, 40>}, {pipeline_mode = #tpu.pipeline_mode<synchronous>, transform_indices = @transform_4, window_bounds = array<i64: 1, 32>}, {pipeline_mode = #tpu.pipeline_mode<synchronous>, transform_indices = @transform_5, window_bounds = array<i64: 1, 32>}, {pipeline_mode = #tpu.pipeline_mode<synchronous>, transform_indices = @transform_6, window_bounds = array<i64: 4, 32>}, {pipeline_mode = #tpu.pipeline_mode<synchronous>, transform_indices = @transform_7, window_bounds = array<i64: 4, 32>}, {pipeline_mode = #tpu.pipeline_mode<synchronous>, transform_indices = @transform_8, window_bounds = array<i64: 1, 32>}, {pipeline_mode = #tpu.pipeline_mode<synchronous>, transform_indices = @transform_9, window_bounds = array<i64: 1, 32>}, {pipeline_mode = #tpu.pipeline_mode<synchronous>, transform_indices = @transform_10, window_bounds = array<i64: 1, 32>}, {pipeline_mode = #tpu.pipeline_mode<synchronous>, transform_indices = @transform_11, window_bounds = array<i64: 1, 32>}, {pipeline_mode = #tpu.pipeline_mode<synchronous>, transform_indices = @transform_12, window_bounds = array<i64: 1, 32>}, {pipeline_mode = #tpu.pipeline_mode<synchronous>, transform_indices = @transform_13, window_bounds = array<i64: 1, 32>}, {transform_indices = @transform_14, window_bounds = array<i64: 2, 8, 32>}, {transform_indices = @transform_15, window_bounds = array<i64: 2, 8, 32>}]} {
    %c0 = arith.constant 0 : index
    %c0_0 = arith.constant 0 : index
    %c0_1 = arith.constant 0 : index
    %0 = vector.load %arg1[%c0, %c0_0, %c0_1] : memref<2x8x32xf32, #tpu.memory_space<vmem>>, vector<2x8x32xf32>
    %1 = vector.shape_cast %0 : vector<2x8x32xf32> to vector<16x32xf32>
    %c0_2 = arith.constant 0 : index
    %c0_3 = arith.constant 0 : index
    %2 = vector.load %arg3[%c0_2, %c0_3] : memref<32x40xf32, #tpu.memory_space<vmem>>, vector<32x40xf32>
    %cst = arith.constant dense<0.000000e+00> : vector<16x40xf32>
    %3 = tpu.matmul %1, %2, %cst {dimension_numbers = #tpu.dot_dimension_numbers<[1], [0], [0], [1], [0, 0, 1, 1], [], []>} : vector<16x32xf32>, vector<32x40xf32>, vector<16x40xf32> -> vector<16x40xf32>
    %4 = vector.extract_strided_slice %3 {offsets = [0, 0], sizes = [16, 32], strides = [1, 1]} : vector<16x40xf32> to vector<16x32xf32>
    %c0_4 = arith.constant 0 : index
    %c0_5 = arith.constant 0 : index
    %5 = vector.load %arg5[%c0_4, %c0_5] : memref<1x32xf32, #tpu.memory_space<vmem>>, vector<1x32xf32>
    %6 = vector.broadcast %5 : vector<1x32xf32> to vector<16x32xf32>
    %7 = arith.addf %4, %6 : vector<16x32xf32>
    %cst_6 = arith.constant 0.000000e+00 : f32
    %8 = vector.broadcast %cst_6 : f32 to vector<16x32xf32>
    %9 = arith.maximumf %7, %8 : vector<16x32xf32>
    %10 = vector.broadcast %cst_6 : f32 to vector<16x32xf32>
    %11 = arith.subf %7, %10 : vector<16x32xf32>
    %12 = arith.cmpf one, %11, %11 : vector<16x32xf32>
    %13 = vector.broadcast %cst_6 : f32 to vector<16x32xf32>
    %14 = arith.addf %7, %13 : vector<16x32xf32>
    %15 = math.absf %11 : vector<16x32xf32>
    %cst_7 = arith.constant 0.000000e+00 : f32
    %16 = vector.broadcast %cst_7 : f32 to vector<16x32xf32>
    %17 = arith.subf %16, %15 : vector<16x32xf32>
    %18 = math.exp %17 : vector<16x32xf32>
    %19 = math.log1p %18 : vector<16x32xf32>
    %20 = arith.addf %9, %19 : vector<16x32xf32>
    %21 = arith.select %12, %14, %20 : vector<16x32xi1>, vector<16x32xf32>
    %22 = vector.shape_cast %21 : vector<16x32xf32> to vector<2x8x32xf32>
    %c0_8 = arith.constant 0 : index
    %c0_9 = arith.constant 0 : index
    %c0_10 = arith.constant 0 : index
    %23 = vector.load %arg17[%c0_8, %c0_9, %c0_10] : memref<2x8x32xf32, #tpu.memory_space<vmem>>, vector<2x8x32xf32>
    tpu.vector_store %arg17[%c0_8, %c0_9, %c0_10], %22 {strides = array<i32>} : memref<2x8x32xf32, #tpu.memory_space<vmem>>, vector<2x8x32xf32>,
    %24 = vector.extract_strided_slice %3 {offsets = [0, 32], sizes = [16, 8], strides = [1, 1]} : vector<16x40xf32> to vector<16x8xf32>
    %25 = vector.shape_cast %24 : vector<16x8xf32> to vector<2x8x8xf32>
    %c0_11 = arith.constant 0 : index
    %c0_12 = arith.constant 0 : index
    %c0_13 = arith.constant 0 : index
    %26 = vector.load %arg19[%c0_11, %c0_12, %c0_13] : memref<2x8x8xf32, #tpu.memory_space<vmem>>, vector<2x8x8xf32>
    tpu.vector_store %arg19[%c0_11, %c0_12, %c0_13], %25 {strides = array<i32>} : memref<2x8x8xf32, #tpu.memory_space<vmem>>, vector<2x8x8xf32>,
    %c0_14 = arith.constant 0 : index
    %c0_15 = arith.constant 0 : index
    %c0_16 = arith.constant 0 : index
    %27 = vector.load %arg2[%c0_14, %c0_15, %c0_16] : memref<2x8x32xf32, #tpu.memory_space<vmem>>, vector<2x8x32xf32>
    %28 = vector.shape_cast %27 : vector<2x8x32xf32> to vector<16x32xf32>
    %c0_17 = arith.constant 0 : index
    %c0_18 = arith.constant 0 : index
    %29 = vector.load %arg4[%c0_17, %c0_18] : memref<32x40xf32, #tpu.memory_space<vmem>>, vector<32x40xf32>
    %cst_19 = arith.constant dense<0.000000e+00> : vector<16x40xf32>
    %30 = tpu.matmul %28, %29, %cst_19 {dimension_numbers = #tpu.dot_dimension_numbers<[1], [0], [0], [1], [0, 0, 1, 1], [], []>} : vector<16x32xf32>, vector<32x40xf32>, vector<16x40xf32> -> vector<16x40xf32>
    %31 = vector.extract_strided_slice %30 {offsets = [0, 0], sizes = [16, 32], strides = [1, 1]} : vector<16x40xf32> to vector<16x32xf32>
    %c0_20 = arith.constant 0 : index
    %c0_21 = arith.constant 0 : index
    %32 = vector.load %arg6[%c0_20, %c0_21] : memref<1x32xf32, #tpu.memory_space<vmem>>, vector<1x32xf32>
    %33 = vector.broadcast %32 : vector<1x32xf32> to vector<16x32xf32>
    %34 = arith.addf %31, %33 : vector<16x32xf32>
    %cst_22 = arith.constant 0.000000e+00 : f32
    %35 = vector.broadcast %cst_22 : f32 to vector<16x32xf32>
    %36 = arith.maximumf %34, %35 : vector<16x32xf32>
    %37 = vector.broadcast %cst_22 : f32 to vector<16x32xf32>
    %38 = arith.subf %34, %37 : vector<16x32xf32>
    %39 = arith.cmpf one, %38, %38 : vector<16x32xf32>
    %40 = vector.broadcast %cst_22 : f32 to vector<16x32xf32>
    %41 = arith.addf %34, %40 : vector<16x32xf32>
    %42 = math.absf %38 : vector<16x32xf32>
    %cst_23 = arith.constant 0.000000e+00 : f32
    %43 = vector.broadcast %cst_23 : f32 to vector<16x32xf32>
    %44 = arith.subf %43, %42 : vector<16x32xf32>
    %45 = math.exp %44 : vector<16x32xf32>
    %46 = math.log1p %45 : vector<16x32xf32>
    %47 = arith.addf %36, %46 : vector<16x32xf32>
    %48 = arith.select %39, %41, %47 : vector<16x32xi1>, vector<16x32xf32>
    %49 = vector.shape_cast %48 : vector<16x32xf32> to vector<2x8x32xf32>
    %c0_24 = arith.constant 0 : index
    %c0_25 = arith.constant 0 : index
    %c0_26 = arith.constant 0 : index
    %50 = vector.load %arg18[%c0_24, %c0_25, %c0_26] : memref<2x8x32xf32, #tpu.memory_space<vmem>>, vector<2x8x32xf32>
    tpu.vector_store %arg18[%c0_24, %c0_25, %c0_26], %49 {strides = array<i32>} : memref<2x8x32xf32, #tpu.memory_space<vmem>>, vector<2x8x32xf32>,
    %51 = vector.extract_strided_slice %30 {offsets = [0, 32], sizes = [16, 8], strides = [1, 1]} : vector<16x40xf32> to vector<16x8xf32>
    %52 = vector.shape_cast %51 : vector<16x8xf32> to vector<2x8x8xf32>
    %c0_27 = arith.constant 0 : index
    %c0_28 = arith.constant 0 : index
    %c0_29 = arith.constant 0 : index
    %53 = vector.load %arg20[%c0_27, %c0_28, %c0_29] : memref<2x8x8xf32, #tpu.memory_space<vmem>>, vector<2x8x8xf32>
    tpu.vector_store %arg20[%c0_27, %c0_28, %c0_29], %52 {strides = array<i32>} : memref<2x8x8xf32, #tpu.memory_space<vmem>>, vector<2x8x8xf32>,
    %c0_30 = arith.constant 0 : index
    %c0_31 = arith.constant 0 : index
    %54 = vector.load %arg7[%c0_30, %c0_31] : memref<4x32xf32, #tpu.memory_space<vmem>>, vector<4x32xf32>
    %c0_32 = arith.constant 0 : index
    %c0_33 = arith.constant 0 : index
    %55 = vector.load %arg8[%c0_32, %c0_33] : memref<4x32xf32, #tpu.memory_space<vmem>>, vector<4x32xf32>
    %c0_34 = arith.constant 0 : index
    %c0_35 = arith.constant 0 : index
    %56 = vector.load %arg9[%c0_34, %c0_35] : memref<1x32xf32, #tpu.memory_space<vmem>>, vector<1x32xf32>
    %c0_36 = arith.constant 0 : index
    %c0_37 = arith.constant 0 : index
    %57 = vector.load %arg10[%c0_36, %c0_37] : memref<1x32xf32, #tpu.memory_space<vmem>>, vector<1x32xf32>
    %c0_38 = arith.constant 0 : index
    %c0_39 = arith.constant 0 : index
    %58 = vector.load %arg11[%c0_38, %c0_39] : memref<1x32xf32, #tpu.memory_space<vmem>>, vector<1x32xf32>
    %c0_40 = arith.constant 0 : index
    %c0_41 = arith.constant 0 : index
    %59 = vector.load %arg12[%c0_40, %c0_41] : memref<1x32xf32, #tpu.memory_space<vmem>>, vector<1x32xf32>
    %c0_42 = arith.constant 0 : index
    %c0_43 = arith.constant 0 : index
    %60 = vector.load %arg13[%c0_42, %c0_43] : memref<1x32xf32, #tpu.memory_space<vmem>>, vector<1x32xf32>
    %c0_44 = arith.constant 0 : index
    %c0_45 = arith.constant 0 : index
    %61 = vector.load %arg14[%c0_44, %c0_45] : memref<1x32xf32, #tpu.memory_space<vmem>>, vector<1x32xf32>
    %cst_46 = arith.constant 0.000000e+00 : f32
    %62 = vector.broadcast %cst_46 : f32 to vector<2x4x32xf32>
    %cst_47 = arith.constant 0.000000e+00 : f32
    %63 = vector.broadcast %cst_47 : f32 to vector<2x4x32xf32>
    %c0_48 = arith.constant 0 : index
    %c0_49 = arith.constant 0 : index
    %c0_50 = arith.constant 0 : index
    %64 = vector.load %arg1[%c0_48, %c0_49, %c0_50] : memref<2x8x32xf32, #tpu.memory_space<vmem>>, vector<2x8x32xf32>
    %c0_51 = arith.constant 0 : index
    %c0_52 = arith.constant 0 : index
    %c0_53 = arith.constant 0 : index
    %65 = vector.load %arg2[%c0_51, %c0_52, %c0_53] : memref<2x8x32xf32, #tpu.memory_space<vmem>>, vector<2x8x32xf32>
    %c0_54 = arith.constant 0 : index
    %c0_55 = arith.constant 0 : index
    %c0_56 = arith.constant 0 : index
    %66 = vector.load %arg17[%c0_54, %c0_55, %c0_56] : memref<2x8x32xf32, #tpu.memory_space<vmem>>, vector<2x8x32xf32>
    %c0_57 = arith.constant 0 : index
    %c0_58 = arith.constant 0 : index
    %c0_59 = arith.constant 0 : index
    %67 = vector.load %arg18[%c0_57, %c0_58, %c0_59] : memref<2x8x32xf32, #tpu.memory_space<vmem>>, vector<2x8x32xf32>
    %c0_60 = arith.constant 0 : index
    %c0_61 = arith.constant 0 : index
    %c0_62 = arith.constant 0 : index
    %68 = vector.load %arg19[%c0_60, %c0_61, %c0_62] : memref<2x8x8xf32, #tpu.memory_space<vmem>>, vector<2x8x8xf32>
    %c0_63 = arith.constant 0 : index
    %c0_64 = arith.constant 0 : index
    %c0_65 = arith.constant 0 : index
    %69 = vector.load %arg20[%c0_63, %c0_64, %c0_65] : memref<2x8x8xf32, #tpu.memory_space<vmem>>, vector<2x8x8xf32>
    %70 = vector.extract_strided_slice %68 {offsets = [0, 0, 0], sizes = [2, 8, 4], strides = [1, 1, 1]} : vector<2x8x8xf32> to vector<2x8x4xf32>
    %71 = vector.extract_strided_slice %68 {offsets = [0, 0, 4], sizes = [2, 8, 4], strides = [1, 1, 1]} : vector<2x8x8xf32> to vector<2x8x4xf32>
    %72 = vector.extract_strided_slice %69 {offsets = [0, 0, 0], sizes = [2, 8, 4], strides = [1, 1, 1]} : vector<2x8x8xf32> to vector<2x8x4xf32>
    %73 = vector.extract_strided_slice %69 {offsets = [0, 0, 4], sizes = [2, 8, 4], strides = [1, 1, 1]} : vector<2x8x8xf32> to vector<2x8x4xf32>
    %74 = vector.shape_cast %66 : vector<2x8x32xf32> to vector<2x8x1x32xf32>
    %75 = vector.shape_cast %54 : vector<4x32xf32> to vector<1x1x4x32xf32>
    %76 = vector.broadcast %74 : vector<2x8x1x32xf32> to vector<2x8x4x32xf32>
    %77 = vector.broadcast %75 : vector<1x1x4x32xf32> to vector<2x8x4x32xf32>
    %78 = arith.mulf %76, %77 : vector<2x8x4x32xf32>
    %79 = math.exp %78 : vector<2x8x4x32xf32>
    %80 = vector.shape_cast %67 : vector<2x8x32xf32> to vector<2x8x1x32xf32>
    %81 = vector.shape_cast %55 : vector<4x32xf32> to vector<1x1x4x32xf32>
    %82 = vector.broadcast %80 : vector<2x8x1x32xf32> to vector<2x8x4x32xf32>
    %83 = vector.broadcast %81 : vector<1x1x4x32xf32> to vector<2x8x4x32xf32>
    %84 = arith.mulf %82, %83 : vector<2x8x4x32xf32>
    %85 = math.exp %84 : vector<2x8x4x32xf32>
    %86 = arith.mulf %66, %64 : vector<2x8x32xf32>
    %87 = vector.shape_cast %86 : vector<2x8x32xf32> to vector<2x8x1x32xf32>
    %88 = vector.shape_cast %70 : vector<2x8x4xf32> to vector<2x8x4x1xf32>
    %89 = vector.broadcast %87 : vector<2x8x1x32xf32> to vector<2x8x4x32xf32>
    %90 = vector.broadcast %88 : vector<2x8x4x1xf32> to vector<2x8x4x32xf32>
    %91 = arith.mulf %89, %90 : vector<2x8x4x32xf32>
    %92 = arith.mulf %67, %65 : vector<2x8x32xf32>
    %93 = vector.shape_cast %92 : vector<2x8x32xf32> to vector<2x8x1x32xf32>
    %94 = vector.shape_cast %72 : vector<2x8x4xf32> to vector<2x8x4x1xf32>
    %95 = vector.broadcast %93 : vector<2x8x1x32xf32> to vector<2x8x4x32xf32>
    %96 = vector.broadcast %94 : vector<2x8x4x1xf32> to vector<2x8x4x32xf32>
    %97 = arith.mulf %95, %96 : vector<2x8x4x32xf32>
    %98 = vector.extract_strided_slice %79 {offsets = [0, 0, 0, 0], sizes = [2, 1, 4, 32], strides = [1, 1, 1, 1]} : vector<2x8x4x32xf32> to vector<2x1x4x32xf32>
    %99 = vector.shape_cast %98 : vector<2x1x4x32xf32> to vector<2x4x32xf32>
    %100 = arith.mulf %99, %62 : vector<2x4x32xf32>
    %101 = vector.extract_strided_slice %91 {offsets = [0, 0, 0, 0], sizes = [2, 1, 4, 32], strides = [1, 1, 1, 1]} : vector<2x8x4x32xf32> to vector<2x1x4x32xf32>
    %102 = vector.shape_cast %101 : vector<2x1x4x32xf32> to vector<2x4x32xf32>
    %103 = arith.addf %100, %102 : vector<2x4x32xf32>
    %104 = vector.extract_strided_slice %85 {offsets = [0, 0, 0, 0], sizes = [2, 1, 4, 32], strides = [1, 1, 1, 1]} : vector<2x8x4x32xf32> to vector<2x1x4x32xf32>
    %105 = vector.shape_cast %104 : vector<2x1x4x32xf32> to vector<2x4x32xf32>
    %106 = arith.mulf %105, %63 : vector<2x4x32xf32>
    %107 = vector.extract_strided_slice %97 {offsets = [0, 0, 0, 0], sizes = [2, 1, 4, 32], strides = [1, 1, 1, 1]} : vector<2x8x4x32xf32> to vector<2x1x4x32xf32>
    %108 = vector.shape_cast %107 : vector<2x1x4x32xf32> to vector<2x4x32xf32>
    %109 = arith.addf %106, %108 : vector<2x4x32xf32>
    %110 = vector.extract_strided_slice %73 {offsets = [0, 0, 0], sizes = [2, 1, 4], strides = [1, 1, 1]} : vector<2x8x4xf32> to vector<2x1x4xf32>
    %111 = vector.shape_cast %110 : vector<2x1x4xf32> to vector<2x4xf32>
    %112 = vector.shape_cast %111 : vector<2x4xf32> to vector<2x4x1xf32>
    %113 = vector.broadcast %112 : vector<2x4x1xf32> to vector<2x4x32xf32>
    %114 = arith.mulf %113, %103 : vector<2x4x32xf32>
    %cst_66 = arith.constant dense<0.000000e+00> : vector<2x32xf32>
    %115 = vector.multi_reduction <add>, %114, %cst_66 [1] : vector<2x4x32xf32> to vector<2x32xf32>
    %116 = vector.shape_cast %115 : vector<2x32xf32> to vector<2x1x32xf32>
    %117 = vector.extract_strided_slice %71 {offsets = [0, 0, 0], sizes = [2, 1, 4], strides = [1, 1, 1]} : vector<2x8x4xf32> to vector<2x1x4xf32>
    %118 = vector.shape_cast %117 : vector<2x1x4xf32> to vector<2x4xf32>
    %119 = vector.shape_cast %118 : vector<2x4xf32> to vector<2x4x1xf32>
    %120 = vector.broadcast %119 : vector<2x4x1xf32> to vector<2x4x32xf32>
    %121 = arith.mulf %120, %109 : vector<2x4x32xf32>
    %cst_67 = arith.constant dense<0.000000e+00> : vector<2x32xf32>
    %122 = vector.multi_reduction <add>, %121, %cst_67 [1] : vector<2x4x32xf32> to vector<2x32xf32>
    %123 = vector.shape_cast %122 : vector<2x32xf32> to vector<2x1x32xf32>
    %124 = vector.extract_strided_slice %79 {offsets = [0, 1, 0, 0], sizes = [2, 1, 4, 32], strides = [1, 1, 1, 1]} : vector<2x8x4x32xf32> to vector<2x1x4x32xf32>
    %125 = vector.shape_cast %124 : vector<2x1x4x32xf32> to vector<2x4x32xf32>
    %126 = arith.mulf %125, %103 : vector<2x4x32xf32>
    %127 = vector.extract_strided_slice %91 {offsets = [0, 1, 0, 0], sizes = [2, 1, 4, 32], strides = [1, 1, 1, 1]} : vector<2x8x4x32xf32> to vector<2x1x4x32xf32>
    %128 = vector.shape_cast %127 : vector<2x1x4x32xf32> to vector<2x4x32xf32>
    %129 = arith.addf %126, %128 : vector<2x4x32xf32>
    %130 = vector.extract_strided_slice %85 {offsets = [0, 1, 0, 0], sizes = [2, 1, 4, 32], strides = [1, 1, 1, 1]} : vector<2x8x4x32xf32> to vector<2x1x4x32xf32>
    %131 = vector.shape_cast %130 : vector<2x1x4x32xf32> to vector<2x4x32xf32>
    %132 = arith.mulf %131, %109 : vector<2x4x32xf32>
    %133 = vector.extract_strided_slice %97 {offsets = [0, 1, 0, 0], sizes = [2, 1, 4, 32], strides = [1, 1, 1, 1]} : vector<2x8x4x32xf32> to vector<2x1x4x32xf32>
    %134 = vector.shape_cast %133 : vector<2x1x4x32xf32> to vector<2x4x32xf32>
    %135 = arith.addf %132, %134 : vector<2x4x32xf32>
    %136 = vector.extract_strided_slice %73 {offsets = [0, 1, 0], sizes = [2, 1, 4], strides = [1, 1, 1]} : vector<2x8x4xf32> to vector<2x1x4xf32>
    %137 = vector.shape_cast %136 : vector<2x1x4xf32> to vector<2x4xf32>
    %138 = vector.shape_cast %137 : vector<2x4xf32> to vector<2x4x1xf32>
    %139 = vector.broadcast %138 : vector<2x4x1xf32> to vector<2x4x32xf32>
    %140 = arith.mulf %139, %129 : vector<2x4x32xf32>
    %cst_68 = arith.constant dense<0.000000e+00> : vector<2x32xf32>
    %141 = vector.multi_reduction <add>, %140, %cst_68 [1] : vector<2x4x32xf32> to vector<2x32xf32>
    %142 = vector.shape_cast %141 : vector<2x32xf32> to vector<2x1x32xf32>
    %143 = vector.extract_strided_slice %71 {offsets = [0, 1, 0], sizes = [2, 1, 4], strides = [1, 1, 1]} : vector<2x8x4xf32> to vector<2x1x4xf32>
    %144 = vector.shape_cast %143 : vector<2x1x4xf32> to vector<2x4xf32>
    %145 = vector.shape_cast %144 : vector<2x4xf32> to vector<2x4x1xf32>
    %146 = vector.broadcast %145 : vector<2x4x1xf32> to vector<2x4x32xf32>
    %147 = arith.mulf %146, %135 : vector<2x4x32xf32>
    %cst_69 = arith.constant dense<0.000000e+00> : vector<2x32xf32>
    %148 = vector.multi_reduction <add>, %147, %cst_69 [1] : vector<2x4x32xf32> to vector<2x32xf32>
    %149 = vector.shape_cast %148 : vector<2x32xf32> to vector<2x1x32xf32>
    %150 = vector.extract_strided_slice %79 {offsets = [0, 2, 0, 0], sizes = [2, 1, 4, 32], strides = [1, 1, 1, 1]} : vector<2x8x4x32xf32> to vector<2x1x4x32xf32>
    %151 = vector.shape_cast %150 : vector<2x1x4x32xf32> to vector<2x4x32xf32>
    %152 = arith.mulf %151, %129 : vector<2x4x32xf32>
    %153 = vector.extract_strided_slice %91 {offsets = [0, 2, 0, 0], sizes = [2, 1, 4, 32], strides = [1, 1, 1, 1]} : vector<2x8x4x32xf32> to vector<2x1x4x32xf32>
    %154 = vector.shape_cast %153 : vector<2x1x4x32xf32> to vector<2x4x32xf32>
    %155 = arith.addf %152, %154 : vector<2x4x32xf32>
    %156 = vector.extract_strided_slice %85 {offsets = [0, 2, 0, 0], sizes = [2, 1, 4, 32], strides = [1, 1, 1, 1]} : vector<2x8x4x32xf32> to vector<2x1x4x32xf32>
    %157 = vector.shape_cast %156 : vector<2x1x4x32xf32> to vector<2x4x32xf32>
    %158 = arith.mulf %157, %135 : vector<2x4x32xf32>
    %159 = vector.extract_strided_slice %97 {offsets = [0, 2, 0, 0], sizes = [2, 1, 4, 32], strides = [1, 1, 1, 1]} : vector<2x8x4x32xf32> to vector<2x1x4x32xf32>
    %160 = vector.shape_cast %159 : vector<2x1x4x32xf32> to vector<2x4x32xf32>
    %161 = arith.addf %158, %160 : vector<2x4x32xf32>
    %162 = vector.extract_strided_slice %73 {offsets = [0, 2, 0], sizes = [2, 1, 4], strides = [1, 1, 1]} : vector<2x8x4xf32> to vector<2x1x4xf32>
    %163 = vector.shape_cast %162 : vector<2x1x4xf32> to vector<2x4xf32>
    %164 = vector.shape_cast %163 : vector<2x4xf32> to vector<2x4x1xf32>
    %165 = vector.broadcast %164 : vector<2x4x1xf32> to vector<2x4x32xf32>
    %166 = arith.mulf %165, %155 : vector<2x4x32xf32>
    %cst_70 = arith.constant dense<0.000000e+00> : vector<2x32xf32>
    %167 = vector.multi_reduction <add>, %166, %cst_70 [1] : vector<2x4x32xf32> to vector<2x32xf32>
    %168 = vector.shape_cast %167 : vector<2x32xf32> to vector<2x1x32xf32>
    %169 = vector.extract_strided_slice %71 {offsets = [0, 2, 0], sizes = [2, 1, 4], strides = [1, 1, 1]} : vector<2x8x4xf32> to vector<2x1x4xf32>
    %170 = vector.shape_cast %169 : vector<2x1x4xf32> to vector<2x4xf32>
    %171 = vector.shape_cast %170 : vector<2x4xf32> to vector<2x4x1xf32>
    %172 = vector.broadcast %171 : vector<2x4x1xf32> to vector<2x4x32xf32>
    %173 = arith.mulf %172, %161 : vector<2x4x32xf32>
    %cst_71 = arith.constant dense<0.000000e+00> : vector<2x32xf32>
    %174 = vector.multi_reduction <add>, %173, %cst_71 [1] : vector<2x4x32xf32> to vector<2x32xf32>
    %175 = vector.shape_cast %174 : vector<2x32xf32> to vector<2x1x32xf32>
    %176 = vector.extract_strided_slice %79 {offsets = [0, 3, 0, 0], sizes = [2, 1, 4, 32], strides = [1, 1, 1, 1]} : vector<2x8x4x32xf32> to vector<2x1x4x32xf32>
    %177 = vector.shape_cast %176 : vector<2x1x4x32xf32> to vector<2x4x32xf32>
    %178 = arith.mulf %177, %155 : vector<2x4x32xf32>
    %179 = vector.extract_strided_slice %91 {offsets = [0, 3, 0, 0], sizes = [2, 1, 4, 32], strides = [1, 1, 1, 1]} : vector<2x8x4x32xf32> to vector<2x1x4x32xf32>
    %180 = vector.shape_cast %179 : vector<2x1x4x32xf32> to vector<2x4x32xf32>
    %181 = arith.addf %178, %180 : vector<2x4x32xf32>
    %182 = vector.extract_strided_slice %85 {offsets = [0, 3, 0, 0], sizes = [2, 1, 4, 32], strides = [1, 1, 1, 1]} : vector<2x8x4x32xf32> to vector<2x1x4x32xf32>
    %183 = vector.shape_cast %182 : vector<2x1x4x32xf32> to vector<2x4x32xf32>
    %184 = arith.mulf %183, %161 : vector<2x4x32xf32>
    %185 = vector.extract_strided_slice %97 {offsets = [0, 3, 0, 0], sizes = [2, 1, 4, 32], strides = [1, 1, 1, 1]} : vector<2x8x4x32xf32> to vector<2x1x4x32xf32>
    %186 = vector.shape_cast %185 : vector<2x1x4x32xf32> to vector<2x4x32xf32>
    %187 = arith.addf %184, %186 : vector<2x4x32xf32>
    %188 = vector.extract_strided_slice %73 {offsets = [0, 3, 0], sizes = [2, 1, 4], strides = [1, 1, 1]} : vector<2x8x4xf32> to vector<2x1x4xf32>
    %189 = vector.shape_cast %188 : vector<2x1x4xf32> to vector<2x4xf32>
    %190 = vector.shape_cast %189 : vector<2x4xf32> to vector<2x4x1xf32>
    %191 = vector.broadcast %190 : vector<2x4x1xf32> to vector<2x4x32xf32>
    %192 = arith.mulf %191, %181 : vector<2x4x32xf32>
    %cst_72 = arith.constant dense<0.000000e+00> : vector<2x32xf32>
    %193 = vector.multi_reduction <add>, %192, %cst_72 [1] : vector<2x4x32xf32> to vector<2x32xf32>
    %194 = vector.shape_cast %193 : vector<2x32xf32> to vector<2x1x32xf32>
    %195 = vector.extract_strided_slice %71 {offsets = [0, 3, 0], sizes = [2, 1, 4], strides = [1, 1, 1]} : vector<2x8x4xf32> to vector<2x1x4xf32>
    %196 = vector.shape_cast %195 : vector<2x1x4xf32> to vector<2x4xf32>
    %197 = vector.shape_cast %196 : vector<2x4xf32> to vector<2x4x1xf32>
    %198 = vector.broadcast %197 : vector<2x4x1xf32> to vector<2x4x32xf32>
    %199 = arith.mulf %198, %187 : vector<2x4x32xf32>
    %cst_73 = arith.constant dense<0.000000e+00> : vector<2x32xf32>
    %200 = vector.multi_reduction <add>, %199, %cst_73 [1] : vector<2x4x32xf32> to vector<2x32xf32>
    %201 = vector.shape_cast %200 : vector<2x32xf32> to vector<2x1x32xf32>
    %202 = vector.extract_strided_slice %79 {offsets = [0, 4, 0, 0], sizes = [2, 1, 4, 32], strides = [1, 1, 1, 1]} : vector<2x8x4x32xf32> to vector<2x1x4x32xf32>
    %203 = vector.shape_cast %202 : vector<2x1x4x32xf32> to vector<2x4x32xf32>
    %204 = arith.mulf %203, %181 : vector<2x4x32xf32>
    %205 = vector.extract_strided_slice %91 {offsets = [0, 4, 0, 0], sizes = [2, 1, 4, 32], strides = [1, 1, 1, 1]} : vector<2x8x4x32xf32> to vector<2x1x4x32xf32>
    %206 = vector.shape_cast %205 : vector<2x1x4x32xf32> to vector<2x4x32xf32>
    %207 = arith.addf %204, %206 : vector<2x4x32xf32>
    %208 = vector.extract_strided_slice %85 {offsets = [0, 4, 0, 0], sizes = [2, 1, 4, 32], strides = [1, 1, 1, 1]} : vector<2x8x4x32xf32> to vector<2x1x4x32xf32>
    %209 = vector.shape_cast %208 : vector<2x1x4x32xf32> to vector<2x4x32xf32>
    %210 = arith.mulf %209, %187 : vector<2x4x32xf32>
    %211 = vector.extract_strided_slice %97 {offsets = [0, 4, 0, 0], sizes = [2, 1, 4, 32], strides = [1, 1, 1, 1]} : vector<2x8x4x32xf32> to vector<2x1x4x32xf32>
    %212 = vector.shape_cast %211 : vector<2x1x4x32xf32> to vector<2x4x32xf32>
    %213 = arith.addf %210, %212 : vector<2x4x32xf32>
    %214 = vector.extract_strided_slice %73 {offsets = [0, 4, 0], sizes = [2, 1, 4], strides = [1, 1, 1]} : vector<2x8x4xf32> to vector<2x1x4xf32>
    %215 = vector.shape_cast %214 : vector<2x1x4xf32> to vector<2x4xf32>
    %216 = vector.shape_cast %215 : vector<2x4xf32> to vector<2x4x1xf32>
    %217 = vector.broadcast %216 : vector<2x4x1xf32> to vector<2x4x32xf32>
    %218 = arith.mulf %217, %207 : vector<2x4x32xf32>
    %cst_74 = arith.constant dense<0.000000e+00> : vector<2x32xf32>
    %219 = vector.multi_reduction <add>, %218, %cst_74 [1] : vector<2x4x32xf32> to vector<2x32xf32>
    %220 = vector.shape_cast %219 : vector<2x32xf32> to vector<2x1x32xf32>
    %221 = vector.extract_strided_slice %71 {offsets = [0, 4, 0], sizes = [2, 1, 4], strides = [1, 1, 1]} : vector<2x8x4xf32> to vector<2x1x4xf32>
    %222 = vector.shape_cast %221 : vector<2x1x4xf32> to vector<2x4xf32>
    %223 = vector.shape_cast %222 : vector<2x4xf32> to vector<2x4x1xf32>
    %224 = vector.broadcast %223 : vector<2x4x1xf32> to vector<2x4x32xf32>
    %225 = arith.mulf %224, %213 : vector<2x4x32xf32>
    %cst_75 = arith.constant dense<0.000000e+00> : vector<2x32xf32>
    %226 = vector.multi_reduction <add>, %225, %cst_75 [1] : vector<2x4x32xf32> to vector<2x32xf32>
    %227 = vector.shape_cast %226 : vector<2x32xf32> to vector<2x1x32xf32>
    %228 = vector.extract_strided_slice %79 {offsets = [0, 5, 0, 0], sizes = [2, 1, 4, 32], strides = [1, 1, 1, 1]} : vector<2x8x4x32xf32> to vector<2x1x4x32xf32>
    %229 = vector.shape_cast %228 : vector<2x1x4x32xf32> to vector<2x4x32xf32>
    %230 = arith.mulf %229, %207 : vector<2x4x32xf32>
    %231 = vector.extract_strided_slice %91 {offsets = [0, 5, 0, 0], sizes = [2, 1, 4, 32], strides = [1, 1, 1, 1]} : vector<2x8x4x32xf32> to vector<2x1x4x32xf32>
    %232 = vector.shape_cast %231 : vector<2x1x4x32xf32> to vector<2x4x32xf32>
    %233 = arith.addf %230, %232 : vector<2x4x32xf32>
    %234 = vector.extract_strided_slice %85 {offsets = [0, 5, 0, 0], sizes = [2, 1, 4, 32], strides = [1, 1, 1, 1]} : vector<2x8x4x32xf32> to vector<2x1x4x32xf32>
    %235 = vector.shape_cast %234 : vector<2x1x4x32xf32> to vector<2x4x32xf32>
    %236 = arith.mulf %235, %213 : vector<2x4x32xf32>
    %237 = vector.extract_strided_slice %97 {offsets = [0, 5, 0, 0], sizes = [2, 1, 4, 32], strides = [1, 1, 1, 1]} : vector<2x8x4x32xf32> to vector<2x1x4x32xf32>
    %238 = vector.shape_cast %237 : vector<2x1x4x32xf32> to vector<2x4x32xf32>
    %239 = arith.addf %236, %238 : vector<2x4x32xf32>
    %240 = vector.extract_strided_slice %73 {offsets = [0, 5, 0], sizes = [2, 1, 4], strides = [1, 1, 1]} : vector<2x8x4xf32> to vector<2x1x4xf32>
    %241 = vector.shape_cast %240 : vector<2x1x4xf32> to vector<2x4xf32>
    %242 = vector.shape_cast %241 : vector<2x4xf32> to vector<2x4x1xf32>
    %243 = vector.broadcast %242 : vector<2x4x1xf32> to vector<2x4x32xf32>
    %244 = arith.mulf %243, %233 : vector<2x4x32xf32>
    %cst_76 = arith.constant dense<0.000000e+00> : vector<2x32xf32>
    %245 = vector.multi_reduction <add>, %244, %cst_76 [1] : vector<2x4x32xf32> to vector<2x32xf32>
    %246 = vector.shape_cast %245 : vector<2x32xf32> to vector<2x1x32xf32>
    %247 = vector.extract_strided_slice %71 {offsets = [0, 5, 0], sizes = [2, 1, 4], strides = [1, 1, 1]} : vector<2x8x4xf32> to vector<2x1x4xf32>
    %248 = vector.shape_cast %247 : vector<2x1x4xf32> to vector<2x4xf32>
    %249 = vector.shape_cast %248 : vector<2x4xf32> to vector<2x4x1xf32>
    %250 = vector.broadcast %249 : vector<2x4x1xf32> to vector<2x4x32xf32>
    %251 = arith.mulf %250, %239 : vector<2x4x32xf32>
    %cst_77 = arith.constant dense<0.000000e+00> : vector<2x32xf32>
    %252 = vector.multi_reduction <add>, %251, %cst_77 [1] : vector<2x4x32xf32> to vector<2x32xf32>
    %253 = vector.shape_cast %252 : vector<2x32xf32> to vector<2x1x32xf32>
    %254 = vector.extract_strided_slice %79 {offsets = [0, 6, 0, 0], sizes = [2, 1, 4, 32], strides = [1, 1, 1, 1]} : vector<2x8x4x32xf32> to vector<2x1x4x32xf32>
    %255 = vector.shape_cast %254 : vector<2x1x4x32xf32> to vector<2x4x32xf32>
    %256 = arith.mulf %255, %233 : vector<2x4x32xf32>
    %257 = vector.extract_strided_slice %91 {offsets = [0, 6, 0, 0], sizes = [2, 1, 4, 32], strides = [1, 1, 1, 1]} : vector<2x8x4x32xf32> to vector<2x1x4x32xf32>
    %258 = vector.shape_cast %257 : vector<2x1x4x32xf32> to vector<2x4x32xf32>
    %259 = arith.addf %256, %258 : vector<2x4x32xf32>
    %260 = vector.extract_strided_slice %85 {offsets = [0, 6, 0, 0], sizes = [2, 1, 4, 32], strides = [1, 1, 1, 1]} : vector<2x8x4x32xf32> to vector<2x1x4x32xf32>
    %261 = vector.shape_cast %260 : vector<2x1x4x32xf32> to vector<2x4x32xf32>
    %262 = arith.mulf %261, %239 : vector<2x4x32xf32>
    %263 = vector.extract_strided_slice %97 {offsets = [0, 6, 0, 0], sizes = [2, 1, 4, 32], strides = [1, 1, 1, 1]} : vector<2x8x4x32xf32> to vector<2x1x4x32xf32>
    %264 = vector.shape_cast %263 : vector<2x1x4x32xf32> to vector<2x4x32xf32>
    %265 = arith.addf %262, %264 : vector<2x4x32xf32>
    %266 = vector.extract_strided_slice %73 {offsets = [0, 6, 0], sizes = [2, 1, 4], strides = [1, 1, 1]} : vector<2x8x4xf32> to vector<2x1x4xf32>
    %267 = vector.shape_cast %266 : vector<2x1x4xf32> to vector<2x4xf32>
    %268 = vector.shape_cast %267 : vector<2x4xf32> to vector<2x4x1xf32>
    %269 = vector.broadcast %268 : vector<2x4x1xf32> to vector<2x4x32xf32>
    %270 = arith.mulf %269, %259 : vector<2x4x32xf32>
    %cst_78 = arith.constant dense<0.000000e+00> : vector<2x32xf32>
    %271 = vector.multi_reduction <add>, %270, %cst_78 [1] : vector<2x4x32xf32> to vector<2x32xf32>
    %272 = vector.shape_cast %271 : vector<2x32xf32> to vector<2x1x32xf32>
    %273 = vector.extract_strided_slice %71 {offsets = [0, 6, 0], sizes = [2, 1, 4], strides = [1, 1, 1]} : vector<2x8x4xf32> to vector<2x1x4xf32>
    %274 = vector.shape_cast %273 : vector<2x1x4xf32> to vector<2x4xf32>
    %275 = vector.shape_cast %274 : vector<2x4xf32> to vector<2x4x1xf32>
    %276 = vector.broadcast %275 : vector<2x4x1xf32> to vector<2x4x32xf32>
    %277 = arith.mulf %276, %265 : vector<2x4x32xf32>
    %cst_79 = arith.constant dense<0.000000e+00> : vector<2x32xf32>
    %278 = vector.multi_reduction <add>, %277, %cst_79 [1] : vector<2x4x32xf32> to vector<2x32xf32>
    %279 = vector.shape_cast %278 : vector<2x32xf32> to vector<2x1x32xf32>
    %280 = vector.extract_strided_slice %79 {offsets = [0, 7, 0, 0], sizes = [2, 1, 4, 32], strides = [1, 1, 1, 1]} : vector<2x8x4x32xf32> to vector<2x1x4x32xf32>
    %281 = vector.shape_cast %280 : vector<2x1x4x32xf32> to vector<2x4x32xf32>
    %282 = arith.mulf %281, %259 : vector<2x4x32xf32>
    %283 = vector.extract_strided_slice %91 {offsets = [0, 7, 0, 0], sizes = [2, 1, 4, 32], strides = [1, 1, 1, 1]} : vector<2x8x4x32xf32> to vector<2x1x4x32xf32>
    %284 = vector.shape_cast %283 : vector<2x1x4x32xf32> to vector<2x4x32xf32>
    %285 = arith.addf %282, %284 : vector<2x4x32xf32>
    %286 = vector.extract_strided_slice %85 {offsets = [0, 7, 0, 0], sizes = [2, 1, 4, 32], strides = [1, 1, 1, 1]} : vector<2x8x4x32xf32> to vector<2x1x4x32xf32>
    %287 = vector.shape_cast %286 : vector<2x1x4x32xf32> to vector<2x4x32xf32>
    %288 = arith.mulf %287, %265 : vector<2x4x32xf32>
    %289 = vector.extract_strided_slice %97 {offsets = [0, 7, 0, 0], sizes = [2, 1, 4, 32], strides = [1, 1, 1, 1]} : vector<2x8x4x32xf32> to vector<2x1x4x32xf32>
    %290 = vector.shape_cast %289 : vector<2x1x4x32xf32> to vector<2x4x32xf32>
    %291 = arith.addf %288, %290 : vector<2x4x32xf32>
    %292 = vector.extract_strided_slice %73 {offsets = [0, 7, 0], sizes = [2, 1, 4], strides = [1, 1, 1]} : vector<2x8x4xf32> to vector<2x1x4xf32>
    %293 = vector.shape_cast %292 : vector<2x1x4xf32> to vector<2x4xf32>
    %294 = vector.shape_cast %293 : vector<2x4xf32> to vector<2x4x1xf32>
    %295 = vector.broadcast %294 : vector<2x4x1xf32> to vector<2x4x32xf32>
    %296 = arith.mulf %295, %285 : vector<2x4x32xf32>
    %cst_80 = arith.constant dense<0.000000e+00> : vector<2x32xf32>
    %297 = vector.multi_reduction <add>, %296, %cst_80 [1] : vector<2x4x32xf32> to vector<2x32xf32>
    %298 = vector.shape_cast %297 : vector<2x32xf32> to vector<2x1x32xf32>
    %299 = vector.extract_strided_slice %71 {offsets = [0, 7, 0], sizes = [2, 1, 4], strides = [1, 1, 1]} : vector<2x8x4xf32> to vector<2x1x4xf32>
    %300 = vector.shape_cast %299 : vector<2x1x4xf32> to vector<2x4xf32>
    %301 = vector.shape_cast %300 : vector<2x4xf32> to vector<2x4x1xf32>
    %302 = vector.broadcast %301 : vector<2x4x1xf32> to vector<2x4x32xf32>
    %303 = arith.mulf %302, %291 : vector<2x4x32xf32>
    %cst_81 = arith.constant dense<0.000000e+00> : vector<2x32xf32>
    %304 = vector.multi_reduction <add>, %303, %cst_81 [1] : vector<2x4x32xf32> to vector<2x32xf32>
    %305 = vector.shape_cast %304 : vector<2x32xf32> to vector<2x1x32xf32>
    %306 = tpu.concatenate %116, %142, %168, %194, %220, %246, %272, %298 in 1 : vector<2x1x32xf32>, vector<2x1x32xf32>, vector<2x1x32xf32>, vector<2x1x32xf32>, vector<2x1x32xf32>, vector<2x1x32xf32>, vector<2x1x32xf32>, vector<2x1x32xf32> -> vector<2x8x32xf32>
    %307 = tpu.concatenate %123, %149, %175, %201, %227, %253, %279, %305 in 1 : vector<2x1x32xf32>, vector<2x1x32xf32>, vector<2x1x32xf32>, vector<2x1x32xf32>, vector<2x1x32xf32>, vector<2x1x32xf32>, vector<2x1x32xf32>, vector<2x1x32xf32> -> vector<2x8x32xf32>
    %308 = vector.shape_cast %56 : vector<1x32xf32> to vector<1x1x32xf32>
    %309 = vector.broadcast %308 : vector<1x1x32xf32> to vector<2x8x32xf32>
    %310 = arith.mulf %64, %309 : vector<2x8x32xf32>
    %311 = arith.addf %306, %310 : vector<2x8x32xf32>
    %cst_82 = arith.constant dense<0.000000e+00> : vector<2x8xf32>
    %312 = vector.multi_reduction <add>, %311, %cst_82 [2] : vector<2x8x32xf32> to vector<2x8xf32>
    %313 = vector.shape_cast %312 : vector<2x8xf32> to vector<2x8x1xf32>
    %cst_83 = arith.constant 3.200000e+01 : f32
    %314 = vector.broadcast %cst_83 : f32 to vector<2x8x1xf32>
    %315 = arith.divf %313, %314 : vector<2x8x1xf32>
    %316 = vector.broadcast %315 : vector<2x8x1xf32> to vector<2x8x32xf32>
    %317 = arith.subf %311, %316 : vector<2x8x32xf32>
    %318 = arith.mulf %317, %317 : vector<2x8x32xf32>
    %cst_84 = arith.constant dense<0.000000e+00> : vector<2x8xf32>
    %319 = vector.multi_reduction <add>, %318, %cst_84 [2] : vector<2x8x32xf32> to vector<2x8xf32>
    %320 = vector.shape_cast %319 : vector<2x8xf32> to vector<2x8x1xf32>
    %cst_85 = arith.constant 3.200000e+01 : f32
    %321 = vector.broadcast %cst_85 : f32 to vector<2x8x1xf32>
    %322 = arith.divf %320, %321 : vector<2x8x1xf32>
    %323 = vector.broadcast %315 : vector<2x8x1xf32> to vector<2x8x32xf32>
    %324 = arith.subf %311, %323 : vector<2x8x32xf32>
    %cst_86 = arith.constant 9.99999974E-6 : f32
    %325 = vector.broadcast %cst_86 : f32 to vector<2x8x1xf32>
    %326 = arith.addf %322, %325 : vector<2x8x1xf32>
    %327 = math.rsqrt %326 : vector<2x8x1xf32>
    %328 = vector.broadcast %327 : vector<2x8x1xf32> to vector<2x8x32xf32>
    %329 = arith.mulf %324, %328 : vector<2x8x32xf32>
    %330 = vector.shape_cast %58 : vector<1x32xf32> to vector<1x1x32xf32>
    %331 = vector.broadcast %330 : vector<1x1x32xf32> to vector<2x8x32xf32>
    %332 = arith.mulf %329, %331 : vector<2x8x32xf32>
    %333 = vector.shape_cast %59 : vector<1x32xf32> to vector<1x1x32xf32>
    %334 = vector.broadcast %333 : vector<1x1x32xf32> to vector<2x8x32xf32>
    %335 = arith.addf %332, %334 : vector<2x8x32xf32>
    %c0_87 = arith.constant 0 : index
    %c0_88 = arith.constant 0 : index
    %c0_89 = arith.constant 0 : index
    %336 = vector.load %arg15[%c0_87, %c0_88, %c0_89] : memref<2x8x32xf32, #tpu.memory_space<vmem>>, vector<2x8x32xf32>
    tpu.vector_store %arg15[%c0_87, %c0_88, %c0_89], %335 {strides = array<i32>} : memref<2x8x32xf32, #tpu.memory_space<vmem>>, vector<2x8x32xf32>,
    %337 = vector.shape_cast %57 : vector<1x32xf32> to vector<1x1x32xf32>
    %338 = vector.broadcast %337 : vector<1x1x32xf32> to vector<2x8x32xf32>
    %339 = arith.mulf %65, %338 : vector<2x8x32xf32>
    %340 = arith.addf %307, %339 : vector<2x8x32xf32>
    %cst_90 = arith.constant dense<0.000000e+00> : vector<2x8xf32>
    %341 = vector.multi_reduction <add>, %340, %cst_90 [2] : vector<2x8x32xf32> to vector<2x8xf32>
    %342 = vector.shape_cast %341 : vector<2x8xf32> to vector<2x8x1xf32>
    %cst_91 = arith.constant 3.200000e+01 : f32
    %343 = vector.broadcast %cst_91 : f32 to vector<2x8x1xf32>
    %344 = arith.divf %342, %343 : vector<2x8x1xf32>
    %345 = vector.broadcast %344 : vector<2x8x1xf32> to vector<2x8x32xf32>
    %346 = arith.subf %340, %345 : vector<2x8x32xf32>
    %347 = arith.mulf %346, %346 : vector<2x8x32xf32>
    %cst_92 = arith.constant dense<0.000000e+00> : vector<2x8xf32>
    %348 = vector.multi_reduction <add>, %347, %cst_92 [2] : vector<2x8x32xf32> to vector<2x8xf32>
    %349 = vector.shape_cast %348 : vector<2x8xf32> to vector<2x8x1xf32>
    %cst_93 = arith.constant 3.200000e+01 : f32
    %350 = vector.broadcast %cst_93 : f32 to vector<2x8x1xf32>
    %351 = arith.divf %349, %350 : vector<2x8x1xf32>
    %352 = vector.broadcast %344 : vector<2x8x1xf32> to vector<2x8x32xf32>
    %353 = arith.subf %340, %352 : vector<2x8x32xf32>
    %cst_94 = arith.constant 9.99999974E-6 : f32
    %354 = vector.broadcast %cst_94 : f32 to vector<2x8x1xf32>
    %355 = arith.addf %351, %354 : vector<2x8x1xf32>
    %356 = math.rsqrt %355 : vector<2x8x1xf32>
    %357 = vector.broadcast %356 : vector<2x8x1xf32> to vector<2x8x32xf32>
    %358 = arith.mulf %353, %357 : vector<2x8x32xf32>
    %359 = vector.shape_cast %60 : vector<1x32xf32> to vector<1x1x32xf32>
    %360 = vector.broadcast %359 : vector<1x1x32xf32> to vector<2x8x32xf32>
    %361 = arith.mulf %358, %360 : vector<2x8x32xf32>
    %362 = vector.shape_cast %61 : vector<1x32xf32> to vector<1x1x32xf32>
    %363 = vector.broadcast %362 : vector<1x1x32xf32> to vector<2x8x32xf32>
    %364 = arith.addf %361, %363 : vector<2x8x32xf32>
    %c0_95 = arith.constant 0 : index
    %c0_96 = arith.constant 0 : index
    %c0_97 = arith.constant 0 : index
    %365 = vector.load %arg16[%c0_95, %c0_96, %c0_97] : memref<2x8x32xf32, #tpu.memory_space<vmem>>, vector<2x8x32xf32>
    tpu.vector_store %arg16[%c0_95, %c0_96, %c0_97], %364 {strides = array<i32>} : memref<2x8x32xf32, #tpu.memory_space<vmem>>, vector<2x8x32xf32>,
    return
  }
  func.func @transform_0(%arg0: i32) -> (i32, i32, i32) {
    %c0_i32 = arith.constant 0 : i32
    %c0_i32_0 = arith.constant 0 : i32
    %c0_i32_1 = arith.constant 0 : i32
    return %arg0, %c0_i32, %c0_i32_0 : i32, i32, i32
  }
  func.func @transform_1(%arg0: i32) -> (i32, i32, i32) {
    %c0_i32 = arith.constant 0 : i32
    %c0_i32_0 = arith.constant 0 : i32
    %c0_i32_1 = arith.constant 0 : i32
    return %arg0, %c0_i32, %c0_i32_0 : i32, i32, i32
  }
  func.func @transform_2(%arg0: i32) -> (i32, i32) {
    %c0_i32 = arith.constant 0 : i32
    %c0_i32_0 = arith.constant 0 : i32
    %c0_i32_1 = arith.constant 0 : i32
    return %c0_i32, %c0_i32_0 : i32, i32
  }
  func.func @transform_3(%arg0: i32) -> (i32, i32) {
    %c0_i32 = arith.constant 0 : i32
    %c0_i32_0 = arith.constant 0 : i32
    %c0_i32_1 = arith.constant 0 : i32
    return %c0_i32, %c0_i32_0 : i32, i32
  }
  func.func @transform_4(%arg0: i32) -> (i32, i32) {
    %c0_i32 = arith.constant 0 : i32
    %c0_i32_0 = arith.constant 0 : i32
    %c0_i32_1 = arith.constant 0 : i32
    return %c0_i32, %c0_i32_0 : i32, i32
  }
  func.func @transform_5(%arg0: i32) -> (i32, i32) {
    %c0_i32 = arith.constant 0 : i32
    %c0_i32_0 = arith.constant 0 : i32
    %c0_i32_1 = arith.constant 0 : i32
    return %c0_i32, %c0_i32_0 : i32, i32
  }
  func.func @transform_6(%arg0: i32) -> (i32, i32) {
    %c0_i32 = arith.constant 0 : i32
    %c0_i32_0 = arith.constant 0 : i32
    %c0_i32_1 = arith.constant 0 : i32
    return %c0_i32, %c0_i32_0 : i32, i32
  }
  func.func @transform_7(%arg0: i32) -> (i32, i32) {
    %c0_i32 = arith.constant 0 : i32
    %c0_i32_0 = arith.constant 0 : i32
    %c0_i32_1 = arith.constant 0 : i32
    return %c0_i32, %c0_i32_0 : i32, i32
  }
  func.func @transform_8(%arg0: i32) -> (i32, i32) {
    %c0_i32 = arith.constant 0 : i32
    %c0_i32_0 = arith.constant 0 : i32
    %c0_i32_1 = arith.constant 0 : i32
    return %c0_i32, %c0_i32_0 : i32, i32
  }
  func.func @transform_9(%arg0: i32) -> (i32, i32) {
    %c0_i32 = arith.constant 0 : i32
    %c0_i32_0 = arith.constant 0 : i32
    %c0_i32_1 = arith.constant 0 : i32
    return %c0_i32, %c0_i32_0 : i32, i32
  }
  func.func @transform_10(%arg0: i32) -> (i32, i32) {
    %c0_i32 = arith.constant 0 : i32
    %c0_i32_0 = arith.constant 0 : i32
    %c0_i32_1 = arith.constant 0 : i32
    return %c0_i32, %c0_i32_0 : i32, i32
  }
  func.func @transform_11(%arg0: i32) -> (i32, i32) {
    %c0_i32 = arith.constant 0 : i32
    %c0_i32_0 = arith.constant 0 : i32
    %c0_i32_1 = arith.constant 0 : i32
    return %c0_i32, %c0_i32_0 : i32, i32
  }
  func.func @transform_12(%arg0: i32) -> (i32, i32) {
    %c0_i32 = arith.constant 0 : i32
    %c0_i32_0 = arith.constant 0 : i32
    %c0_i32_1 = arith.constant 0 : i32
    return %c0_i32, %c0_i32_0 : i32, i32
  }
  func.func @transform_13(%arg0: i32) -> (i32, i32) {
    %c0_i32 = arith.constant 0 : i32
    %c0_i32_0 = arith.constant 0 : i32
    %c0_i32_1 = arith.constant 0 : i32
    return %c0_i32, %c0_i32_0 : i32, i32
  }
  func.func @transform_14(%arg0: i32) -> (i32, i32, i32) {
    %c0_i32 = arith.constant 0 : i32
    %c0_i32_0 = arith.constant 0 : i32
    %c0_i32_1 = arith.constant 0 : i32
    return %arg0, %c0_i32, %c0_i32_0 : i32, i32, i32
  }
  func.func @transform_15(%arg0: i32) -> (i32, i32, i32) {
    %c0_i32 = arith.constant 0 : i32
    %c0_i32_0 = arith.constant 0 : i32
    %c0_i32_1 = arith.constant 0 : i32
    return %arg0, %c0_i32, %c0_i32_0 : i32, i32, i32
  }
}

</mosaic_0001>

<bundles_post_ra>
// kernel: tpu_custom_call.1
= control target key start
LH: loop header
LB: loop body
LE: loop exit
PB: predicated region body
PF: predicated region fallthrough
CT: control target
= control target key end

     0   :  { %21 = vsyncpa [#allocation7], 0  ;;  %s2644_s0 = inlined_call_operand.hbm [shape: f32[2,8,32], index: 0, kind: input, shape index: {}]   ;;  %s2645_s1 = inlined_call_operand.hbm [shape: f32[2,8,32], index: 1, kind: input, shape index: {}]   ;;  %s2646_s2 = inlined_call_operand.hbm [shape: f32[32,40], index: 2, kind: input, shape index: {}]   ;;  %s2647_s3 = inlined_call_operand.hbm [shape: f32[32,40], index: 3, kind: input, shape index: {}]   ;;  %s2648_s4 = inlined_call_operand.vmem [shape: f32[1,32], index: 4, kind: input, shape index: {}]   ;;  %s2649_s5 = inlined_call_operand.hbm [shape: f32[1,32], index: 5, kind: input, shape index: {}]   ;;  %s2650_s6 = inlined_call_operand.vmem [shape: f32[4,32], index: 6, kind: input, shape index: {}]   ;;  %s2651_s7 = inlined_call_operand.hbm [shape: f32[4,32], index: 7, kind: input, shape index: {}]   ;;  %s2652_s8 = inlined_call_operand.vmem [shape: f32[1,32], index: 8, kind: input, shape index: {}]   ;;  %s2653_s9 = inlined_call_operand.vmem [shape: f32[1,32], index: 9, kind: input, shape index: {}]   ;;  %s2654_s10 = inlined_call_operand.vmem [shape: f32[1,32], index: 10, kind: input, shape index: {}]   ;;  %s2655_s11 = inlined_call_operand.vmem [shape: f32[1,32], index: 11, kind: input, shape index: {}]   ;;  %s2656_s12 = inlined_call_operand.vmem [shape: f32[1,32], index: 12, kind: input, shape index: {}]   ;;  %s2657_s13 = inlined_call_operand.vmem [shape: f32[1,32], index: 13, kind: input, shape index: {}]   ;;  %s2658_s14 = inlined_call_operand.hbm [shape: f32[2,8,32], index: 14, kind: output, shape index: {0}]   ;;  %s2659_s15 = inlined_call_operand.hbm [shape: f32[2,8,32], index: 15, kind: output, shape index: {1}]  }
   0x1   :  { %22 = vsyncpa [#allocation10], 0 }
   0x2   :  { %23 = vsyncpa [#allocation13], 0 }
   0x3   :  { %24 = vsyncpa [#allocation16], 0 }
   0x4   :  { %25 = vsyncpa [#allocation8], 0 }
   0x5   :  { %26 = vsyncpa [#allocation19], 0  ;;  %s44_s20 = sshll.u32 %s2645_s1, 4  ;;  %s1952_s21 = smov [#allocation9]   ;;  %s45_s20 = int_to_ptr.hbm [resolvable:$true] %s44_s20 }
   0x6   :  { %s46_s22 = sshll.u32 %s1952_s21, 4  ;;  %s70_s25 = sshll.u32 %s2647_s3, 4  ;;  %s47_s22 = int_to_ptr.vmem [resolvable:$true] %s46_s22  ;;  %s71_s25 = int_to_ptr.hbm [resolvable:$true] %s70_s25 }
   0x7   :  { %s1953_s26 = smov 128   ;;  %s1954_s27 = smov 8  }
   0x8   :  { %52 = dma.hbm_to_vmem [thread:$0]  %s45_s20, 256, %s47_s22, [#allocation10], %s1953_s26, %s1953_s26, %s1954_s27  }
   0x9   :  { %s1955_s28 = smov [#allocation12]   ;;  %s31_s1 = sshll.u32 %s2644_s0, 4  ;;  %s32_s1 = int_to_ptr.hbm [resolvable:$true] %s31_s1 }
   0xa   :  { %s72_s29 = sshll.u32 %s1955_s28, 4  ;;  %s57_s18 = sshll.u32 %s2646_s2, 4  ;;  %s73_s29 = int_to_ptr.vmem [resolvable:$true] %s72_s29  ;;  %s58_s18 = int_to_ptr.hbm [resolvable:$true] %s57_s18 }
   0xb   :  { %78 = dma.hbm_to_vmem [thread:$0]  %s71_s25, 512, %s73_s29, [#allocation13], %s1953_s26, %s1953_s26, %s1954_s27  }
   0xc   :  { %s1956_s19 = smov [#allocation6]   ;;  %s1957_s20 = smov [#allocation11]  }
   0xd   :  { %s33_s21 = sshll.u32 %s1956_s19, 4  ;;  %s59_s0 = sshll.u32 %s1957_s20, 4  ;;  %s34_s21 = int_to_ptr.vmem [resolvable:$true] %s33_s21  ;;  %s60_s0 = int_to_ptr.vmem [resolvable:$true] %s59_s0 }
   0xe   :  { %39 = dma.hbm_to_vmem [thread:$0]  %s32_s1, 256, %s34_s21, [#allocation7], %s1953_s26, %s1953_s26, %s1954_s27  }
   0xf   :  { %s86_s24 = sshll.u32 %s2649_s5, 4  ;;  %s99_s28 = sshll.u32 %s2651_s7, 4  ;;  %s87_s24 = int_to_ptr.hbm [resolvable:$true] %s86_s24  ;;  %s100_s28 = int_to_ptr.hbm [resolvable:$true] %s99_s28 }
  0x10   :  { %65 = dma.hbm_to_vmem [thread:$0]  %s58_s18, 512, %s60_s0, [#allocation10], %s1953_s26, %s1953_s26, %s1954_s27  }
  0x11   :  { %s1958_s29 = smov [#allocation14]   ;;  %s1959_s16 = smov [#allocation15]  }
  0x12   :  { %s88_s30 = sshll.u32 %s1958_s29, 4  ;;  %s101_s1 = sshll.u32 %s1959_s16, 4  ;;  %s89_s30 = int_to_ptr.vmem [resolvable:$true] %s88_s30  ;;  %s102_s1 = int_to_ptr.vmem [resolvable:$true] %s101_s1 }
  0x13   :  { %91 = dma.hbm_to_vmem [thread:$0]  %s87_s24, 16, %s89_s30, [#allocation13]  }
  0x14   :  { %104 = dma.hbm_to_vmem [thread:$0]  %s100_s28, 64, %s102_s1, [#allocation16]  }
  0x15   :  { %1940 = dma.done.wait [#allocation7], 256  }
  0x16   :  { %1941 = vsyncadd [#allocation7], 4294967040 }
  0x17   :  { %1942 = dma.done.wait [#allocation10], 768  }
  0x18   :  { %1943 = vsyncadd [#allocation10], 4294966528 }
  0x19   :  { %1944 = dma.done.wait [#allocation13], 528  }
  0x1a   :  { %1945 = vsyncadd [#allocation13], 4294966768 }
  0x1b   :  { %1946 = dma.done.wait [#allocation16], 64  }
  0x1c   :  { %1947 = vsyncadd [#allocation16], 4294967232  ;;  %v146_v0 = vld [vmem:[#allocation11 + $0x18] sm:$0xff]  ;;  %v145_v2 = vld [vmem:[#allocation11 + $0x10] sm:$0xff]  ;;  %vm147_vm0 = vcmask 261120   ;;  %s1960_s3 = smov 96  }
  0x1d   :  { %v237_v1 = vld [vmem:[#allocation12 + $0x18] sm:$0xff]  ;;  %166 = vmatpush.msra.mxu0 %v146_v0  ;;  %v236_v3 = vld [vmem:[#allocation12 + $0x10] sm:$0xff]  ;;  %v144_v4 = vld [vmem:[#allocation11 + $0x8] sm:$0xff]  ;;  %1614 = vmatpush.msra.mxu2 %v146_v0  ;;  %vm229_vm9 = vcmask 64512   ;;  %vm911_vm10 = vcmask 257024   ;;  %vm1402_vm11 = vcmask 1040384  }
  0x1e   :  { %256 = vmatpush.msra.mxu1 %v237_v1  ;;  %v235_v5 = vld [vmem:[#allocation12 + $0x8] sm:$0xff]  ;;  %v143_v6 = vld [vmem:[#allocation11] sm:$0xff]  ;;  %1618 = vmatpush.msra.mxu3 %v237_v1  ;;  %v2076_v9 = vld [vmem:[#allocation9] sm:$0xff]  ;;  %vm1405_vm12 = vcmask 1041408   ;;  %vm1411_vm13 = vcmask 1043456   ;;  %vm1408_vm14 = vcmask 1042432  }
  0x1f   :  { %167 = vmatpush.msra.mxu0 %v145_v2  ;;  %v234_v7 = vld [vmem:[#allocation12] sm:$0xff]  ;;  %1615 = vmatpush.msra.mxu2 %v145_v2  ;;  %v142_v10 = vld [vmem:[#allocation6 + $0x8] sm:$0xff]  ;;  %v233_v11 = vld [vmem:[#allocation9 + $0x8] sm:$0xff]  ;;  %vm1414_vm15 = vcmask 1044480   ;;  %s1576_s25 = sshll.u32 %s2658_s14, 4  ;;  %s1963_s28 = smov [#allocation18]   ;;  %s1577_s25 = int_to_ptr.hbm [resolvable:$true] %s1576_s25 }
  0x20   :  { %257 = vmatpush.msra.mxu1 %v236_v3  ;;  %v2074_v8 = vld [vmem:[#allocation6] sm:$0xff]  ;;  %1619 = vmatpush.msra.mxu3 %v236_v3  ;;  %s1587_s14 = sshll.u32 %s1963_s28, 4  ;;  %s1589_s16 = sshll.u32 %s2659_s15, 4  ;;  %s1588_s14 = int_to_ptr.vmem [resolvable:$true] %s1587_s14  ;;  %s1590_s16 = int_to_ptr.hbm [resolvable:$true] %s1589_s16 }
  0x21   :  { %168 = vmatpush.msra.mxu0 %v144_v4  ;;  %1616 = vmatpush.msra.mxu2 %v144_v4  ;;  %v1646_v12 = vld [vmem:[%s2648_s4] ss:$0 sm:$0xff] }
  0x22   :  { %258 = vmatpush.msra.mxu1 %v235_v5  ;;  %1620 = vmatpush.msra.mxu3 %v235_v5  ;;  %v1647_v13 = vld [vmem:[#allocation14] ss:$0 sm:$0xff] }
  0x23   :  { %169 = vmatpush.msra.mxu0 %v143_v6  ;;  %1617 = vmatpush.msra.mxu2 %v143_v6 }
  0x24   :  { %259 = vmatpush.msra.mxu1 %v234_v7  ;;  %1610 = vmatmul.msk.f32.vlgmr.msra.gmra.mxu0 %vm147_vm0, %v2074_v8 }
  0x25   :  { %1612 = vmatmul.msk.f32.vlgmr.msra.gmra.mxu1 %vm147_vm0, %v2076_v9  ;;  %1621 = vmatpush.msra.mxu3 %v234_v7 }
  0x26   :  { %1611 = vmatmul.msk.f32.vlgmr.msra.gmra.mxu2 %vm147_vm0, %v142_v10  ;;  %1613 = vmatmul.msk.f32.vlgmr.msra.gmra.mxu3 %vm147_vm0, %v233_v11 }
  0xa1   :  { %v171_v14 = vpop.f32.mrf.mxu0 }
  0xa2   :  { %v261_v15 = vpop.f32.mrf.mxu1  ;;  %v2087_v16 = vadd.f32 %v1646_v12, %v171_v14  ;;  %223 = vrot.lane.b32.xlu0 %v171_v14, %s1960_s3 }
  0xa3   :  { %v2089_v17 = vadd.f32 %v1647_v13, %v261_v15  ;;  %313 = vrot.lane.b32.xlu1 %v261_v15, %s1960_s3 }
  0xa4   :  { %v189_v18 = vand.u32 2147483647, %v2087_v16  ;;  %v183_v50 = vmax.f32 %v2087_v16, 0.0  ;;  %vm185_vm3 = vcmp.ne.f32.partialorder %v2087_v16, %v2087_v16 }
  0xa5   :  { %v279_v19 = vand.u32 2147483647, %v2089_v17  ;;  %v273_v54 = vmax.f32 %v2089_v17, 0.0  ;;  %vm275_vm4 = vcmp.ne.f32.partialorder %v2089_v17, %v2089_v17 }
  0xa6   :  { %v191_v20 = vsub.f32 0.0, %v189_v18 }
  0xa7   :  { %v281_v21 = vsub.f32 0.0, %v279_v19 }
  0xa8   :  { %v193_v22 = vmul.f32 1.442695, %v191_v20  ;;  %v552_v20 = vlaneseq }
  0xa9   :  { %v283_v23 = vmul.f32 1.442695, %v281_v21  ;;  %v174_v24 = vpop.f32.mrf.mxu2  ;;  %v264_v25 = vpop.f32.mrf.mxu3 }
  0xaa   :  { %1654 = vpow2.f32 %v193_v22  ;;  %v2093_v26 = vadd.f32 %v1646_v12, %v174_v24  ;;  %v2095_v27 = vadd.f32 %v1647_v13, %v264_v25  ;;  %225 = vrot.lane.b32.xlu0 %v174_v24, %s1960_s3  ;;  %v2119_v21 = vshrl.u32 %v552_v20, 7 }
  0xab   :  { %315 = vrot.lane.b32.xlu1 %v264_v25, %s1960_s3  ;;  %1656 = vpow2.f32 %v283_v23 }
  0xac   :  { %v190_v28 = vand.u32 2147483647, %v2093_v26  ;;  %v280_v29 = vand.u32 2147483647, %v2095_v27  ;;  %v184_v6 = vmax.f32 %v2093_v26, 0.0  ;;  %vm186_vm6 = vcmp.ne.f32.partialorder %v2093_v26, %v2093_v26  ;;  %1636 = vset.pattern.permute.xlu1 %v2119_v21  ;;  %1635 = vset.pattern.permute.xlu0 %v2119_v21 }
  0xad   :  { %v274_v13 = vmax.f32 %v2095_v27, 0.0  ;;  %vm276_vm8 = vcmp.ne.f32.partialorder %v2095_v27, %v2095_v27  ;;  %1634 = vset.pattern.permute.xlu2 %v2119_v21 }
  0xae   :  { %v192_v30 = vsub.f32 0.0, %v190_v28  ;;  %v282_v31 = vsub.f32 0.0, %v280_v29 }
  0xb0   :  { %v1655_v32 = vpop.eup %1654  ;;  %v195_v33 = vmul.f32 1.442695, %v192_v30  ;;  %v285_v36 = vmul.f32 1.442695, %v282_v31 }
  0xb1   :  { %v1657_v34 = vpop.eup %1656  ;;  %v197_v35 = vadd.f32 1.0, %v1655_v32  ;;  %v200_v37 = vmul.f32 -0.5, %v1655_v32  ;;  %v203_v43 = vand.u32 2147483647, %v1655_v32 }
  0xb2   :  { %v287_v38 = vadd.f32 1.0, %v1657_v34  ;;  %v290_v39 = vmul.f32 -0.5, %v1657_v34  ;;  %1658 = vpow2.f32 %v195_v33  ;;  %v293_v42 = vand.u32 2147483647, %v1657_v34 }
  0xb3   :  { %1660 = vlog2.f32 %v197_v35  ;;  %v201_v41 = vadd.f32 1.0, %v200_v37  ;;  %vm204_vm2 = vcmp.lt.f32.partialorder %v203_v43, 0.0004427343 }
  0xb4   :  { %1662 = vlog2.f32 %v287_v38  ;;  %v291_v40 = vadd.f32 1.0, %v290_v39  ;;  %vm294_vm1 = vcmp.lt.f32.partialorder %v293_v42, 0.0004427343 }
  0xb5   :  { %1664 = vpow2.f32 %v285_v36  ;;  %v202_v52 = vmul.f32 %v1655_v32, %v201_v41  ;;  %v2139_v41 = vadd.s32 4, %v2119_v21 }
  0xb6   :  { %v292_v46 = vmul.f32 %v1657_v34, %v291_v40 }
  0xb8   :  { %v1659_v44 = vpop.eup %1658 }
  0xb9   :  { %v1661_v45 = vpop.eup %1660  ;;  %v206_v47 = vadd.f32 1.0, %v1659_v44  ;;  %v209_v48 = vmul.f32 -0.5, %v1659_v44  ;;  %v212_v62 = vand.u32 2147483647, %v1659_v44 }
  0xba   :  { %v1663_v49 = vpop.eup %1662  ;;  %v199_v51 = vmul.f32 0.6931472, %v1661_v45 }
  0xbb   :  { %v1665_v53 = vpop.eup %1664  ;;  %v289_v55 = vmul.f32 0.6931472, %v1663_v49  ;;  %1666 = vlog2.f32 %v206_v47  ;;  %v210_v57 = vadd.f32 1.0, %v209_v48  ;;  %vm213_vm5 = vcmp.lt.f32.partialorder %v212_v62, 0.0004427343 }
  0xbc   :  { %v205_v56 = vsel %vm204_vm2, %v202_v52, %v199_v51  ;;  %v296_v58 = vadd.f32 1.0, %v1665_v53  ;;  %v299_v59 = vmul.f32 -0.5, %v1665_v53  ;;  %v302_v4 = vand.u32 2147483647, %v1665_v53 }
  0xbd   :  { %v215_v60 = vadd.f32 %v205_v56, %v183_v50  ;;  %v295_v61 = vsel %vm294_vm1, %v292_v46, %v289_v55  ;;  %v211_v3 = vmul.f32 %v1659_v44, %v210_v57  ;;  %vm1417_vm1 = vcmask 1045504  }
  0xbe   :  { %v305_v63 = vadd.f32 %v295_v61, %v273_v54  ;;  %1668 = vlog2.f32 %v296_v58  ;;  %v300_v1 = vadd.f32 1.0, %v299_v59  ;;  %vm303_vm7 = vcmp.lt.f32.partialorder %v302_v4, 0.0004427343  ;;  %v2183_v59 = vld [vmem:[%s2650_s6] sm:$0xf] }
  0xbf   :  { %v217_v0 = vsel %vm185_vm3, %v2087_v16, %v215_v60  ;;  %vm1420_vm2 = vcmask 1046528  }
  0xc0   :  { %219 = vst.msk [vmem:[#allocation2] sm:$0xff] %vm147_vm0, %v217_v0  ;;  %v307_v2 = vsel %vm275_vm4, %v2089_v17, %v305_v63  ;;  %v301_v10 = vmul.f32 %v1665_v53, %v300_v1  ;;  %v2188_v63 = vld [vmem:[#allocation15] sm:$0xf] }
  0xc1   :  { %v1667_v5 = vpop.eup %1666  ;;  %309 = vst.msk [vmem:[#allocation3] sm:$0xff] %vm147_vm0, %v307_v2 }
  0xc2   :  { %v208_v7 = vmul.f32 0.6931472, %v1667_v5 }
  0xc4   :  { %v1669_v11 = vpop.eup %1668  ;;  %v214_v12 = vsel %vm213_vm5, %v211_v3, %v208_v7 }
  0xc5   :  { %v216_v14 = vadd.f32 %v214_v12, %v184_v6  ;;  %v298_v15 = vmul.f32 0.6931472, %v1669_v11 }
  0xc7   :  { %v218_v16 = vsel %vm186_vm6, %v2093_v26, %v216_v14  ;;  %v304_v17 = vsel %vm303_vm7, %v301_v10, %v298_v15  ;;  %v2172_v54 = vld [vmem:[#allocation2] sm:$0xff] }
  0xc8   :  { %220 = vst.msk [vmem:[#allocation2 + $0x8] sm:$0xff] %vm147_vm0, %v218_v16  ;;  %v306_v18 = vadd.f32 %v304_v17, %v274_v13  ;;  %v2174_v55 = vld [vmem:[#allocation3] sm:$0xff]  ;;  %v357_v57 = vperm.slane %v2172_v54, 0  ;;  %v343_v5 = vrot.slane %v2172_v54, 1  ;;  %v344_v20 = vrot.slane %v2172_v54, 2 }
  0xc9   :  { %v453_v61 = vperm.slane %v2174_v55, 0  ;;  %v439_v0 = vrot.slane %v2174_v55, 1  ;;  %v440_v7 = vrot.slane %v2174_v55, 2  ;;  %v441_v17 = vrot.slane %v2174_v55, 3 }
  0xca   :  { %v308_v19 = vsel %vm276_vm8, %v2095_v27, %v306_v18  ;;  %v389_v1 = vmul.f32 %v357_v57, %v2183_v59  ;;  %v358_v14 = vperm.slane %v343_v5, 0 }
  0xcb   :  { %310 = vst.msk [vmem:[#allocation3 + $0x8] sm:$0xff] %vm147_vm0, %v308_v19  ;;  %v485_v4 = vmul.f32 %v453_v61, %v2188_v63  ;;  %v454_v6 = vperm.slane %v439_v0, 0  ;;  %v455_v19 = vperm.slane %v440_v7, 0  ;;  %v346_v61 = vrot.slane %v2172_v54, 4 }
  0xcc   :  { %v405_v10 = vmul.f32 1.442695, %v389_v1 }
  0xcd   :  { %v501_v13 = vmul.f32 1.442695, %v485_v4  ;;  %v486_v18 = vmul.f32 %v454_v6, %v2188_v63 }
  0xce   :  { %1670 = vpow2.f32 %v405_v10 }
  0xcf   :  { %1672 = vpow2.f32 %v501_v13  ;;  %v444_v13 = vrot.slane %v2174_v55, 6 }
 0x114   :  { %v224_v22 = vpop.permute.xlu0 %223 }
 0x115   :  { %v314_v23 = vpop.permute.xlu1 %313  ;;  %230 = vst.msk [vmem:[#allocation4] sm:$0xff] %vm229_vm9, %v224_v22 }
 0x116   :  { %319 = vst.msk [vmem:[#allocation5] sm:$0xff] %vm229_vm9, %v314_v23 }
 0x11c   :  { %v2126_v24 = vld [vmem:[#allocation4] sm:$0xff]  ;;  %v226_v43 = vpop.permute.xlu0 %225 }
 0x11d   :  { %v572_v25 = vperm.slane %v2126_v24, 3  ;;  %v565_v26 = vperm.slane %v2126_v24, 2  ;;  %v551_v27 = vperm.slane %v2126_v24, 0  ;;  %v586_v28 = vperm.slane %v2126_v24, 5  ;;  %v339_v31 = vld [vmem:[#allocation5] sm:$0xff]  ;;  %231 = vst.msk [vmem:[#allocation4 + $0x8] sm:$0xff] %vm229_vm9, %v226_v43  ;;  %v316_v44 = vpop.permute.xlu1 %315 }
 0x11e   :  { %v600_v29 = vperm.slane %v2126_v24, 7  ;;  %v558_v30 = vperm.slane %v2126_v24, 1  ;;  %v736_v32 = vperm.slane %v339_v31, 1  ;;  %v729_v33 = vperm.slane %v339_v31, 0  ;;  %320 = vst.msk [vmem:[#allocation5 + $0x8] sm:$0xff] %vm229_vm9, %v316_v44 }
 0x11f   :  { %577 = vperm.xlu1 %1636, %v572_v25   ;;  %570 = vperm.xlu0 %1635, %v565_v26   ;;  %v579_v34 = vperm.slane %v2126_v24, 4  ;;  %v757_v35 = vperm.slane %v339_v31, 4  ;;  %v750_v36 = vperm.slane %v339_v31, 3  ;;  %v593_v37 = vperm.slane %v2126_v24, 6 }
 0x120   :  { %556 = vperm.xlu2 %1634, %v551_v27   ;;  %v778_v38 = vperm.slane %v339_v31, 7  ;;  %v771_v39 = vperm.slane %v339_v31, 6  ;;  %v743_v40 = vperm.slane %v339_v31, 2  ;;  %v764_v42 = vperm.slane %v339_v31, 5 }
 0x121   :  { %v359_v31 = vperm.slane %v344_v20, 0  ;;  %v443_v44 = vrot.slane %v2174_v55, 5 }
 0x123   :  { %v391_v57 = vmul.f32 %v359_v31, %v2183_v59 }
 0x124   :  { %v2148_v45 = vld [vmem:[#allocation4 + $0x8] sm:$0xff] }
 0x125   :  { %v621_v47 = vperm.slane %v2148_v45, 2  ;;  %v607_v48 = vperm.slane %v2148_v45, 0  ;;  %v642_v50 = vperm.slane %v2148_v45, 5  ;;  %v628_v51 = vperm.slane %v2148_v45, 3  ;;  %v2170_v53 = vld [vmem:[#allocation5 + $0x8] sm:$0xff] }
 0x126   :  { %v614_v52 = vperm.slane %v2148_v45, 1  ;;  %v792_v56 = vperm.slane %v2170_v53, 1  ;;  %v649_v60 = vperm.slane %v2148_v45, 6  ;;  %v635_v62 = vperm.slane %v2148_v45, 4 }
 0x127   :  { %591 = vperm.xlu1 %1636, %v586_v28   ;;  %605 = vperm.xlu0 %1635, %v600_v29   ;;  %v813_v11 = vperm.slane %v2170_v53, 4  ;;  %v799_v12 = vperm.slane %v2170_v53, 2  ;;  %v656_v16 = vperm.slane %v2148_v45, 7 }
 0x128   :  { %563 = vperm.xlu2 %1634, %v558_v30  }
 0x12f   :  { %741 = vperm.xlu1 %1636, %v736_v32   ;;  %734 = vperm.xlu0 %1635, %v729_v33  }
 0x130   :  { %584 = vperm.xlu2 %1634, %v579_v34  }
 0x137   :  { %762 = vperm.xlu1 %1636, %v757_v35   ;;  %755 = vperm.xlu0 %1635, %v750_v36  }
 0x138   :  { %598 = vperm.xlu2 %1634, %v593_v37  }
 0x13f   :  { %783 = vperm.xlu1 %1636, %v778_v38   ;;  %776 = vperm.xlu0 %1635, %v771_v39  }
 0x140   :  { %748 = vperm.xlu2 %1634, %v743_v40  }
 0x147   :  { %1637 = vset.pattern.permute.xlu1 %v2139_v41  ;;  %1638 = vset.pattern.permute.xlu0 %v2139_v41 }
 0x148   :  { %769 = vperm.xlu2 %1634, %v764_v42  }
 0x14f   :  { %901 = vperm.xlu1 %1637, %v729_v33   ;;  %930 = vperm.xlu0 %1638, %v551_v27   ;;  %v503_v27 = vmul.f32 1.442695, %v486_v18  ;;  %v345_v33 = vrot.slane %v2172_v54, 3 }
 0x150   :  { %1639 = vset.pattern.permute.xlu2 %v2139_v41 }
 0x151   :  { %1674 = vpow2.f32 %v503_v27  ;;  %v360_v7 = vperm.slane %v345_v33, 0  ;;  %v409_v27 = vmul.f32 1.442695, %v391_v57 }
 0x153   :  { %v392_v33 = vmul.f32 %v360_v7, %v2183_v59 }
 0x157   :  { %1030 = vperm.xlu1 %1637, %v743_v40   ;;  %1058 = vperm.xlu0 %1638, %v565_v26   ;;  %v456_v26 = vperm.slane %v441_v17, 0 }
 0x158   :  { %966 = vperm.xlu2 %1639, %v736_v32   ;;  %v2232_v32 = vmul.f32 %v2174_v55, %v2076_v9 }
 0x159   :  { %v488_v40 = vmul.f32 %v456_v26, %v2188_v63  ;;  %v458_v26 = vperm.slane %v443_v44, 0 }
 0x15a   :  { %v715_v1 = vrot.slane %v2232_v32, 1  ;;  %v841_v4 = vperm.slane %v2232_v32, 0 }
 0x15b   :  { %v507_v20 = vmul.f32 1.442695, %v488_v40  ;;  %v490_v57 = vmul.f32 %v458_v26, %v2188_v63 }
 0x15d   :  { %v511_v26 = vmul.f32 1.442695, %v490_v57 }
 0x15f   :  { %1122 = vperm.xlu1 %1637, %v572_v25   ;;  %1158 = vperm.xlu0 %1638, %v757_v35   ;;  %v390_v25 = vmul.f32 %v358_v14, %v2183_v59  ;;  %v820_v35 = vperm.slane %v2170_v53, 5 }
 0x160   :  { %994 = vperm.xlu2 %1639, %v558_v30   ;;  %v442_v30 = vrot.slane %v2174_v55, 4 }
 0x162   :  { %v457_v43 = vperm.slane %v442_v30, 0  ;;  %v842_v30 = vperm.slane %v715_v1, 0 }
 0x167   :  { %1222 = vperm.xlu1 %1637, %v764_v42   ;;  %1250 = vperm.xlu0 %1638, %v586_v28   ;;  %v487_v28 = vmul.f32 %v455_v19, %v2188_v63 }
 0x168   :  { %1094 = vperm.xlu2 %1639, %v750_v36   ;;  %v1671_v36 = vpop.eup %1670 }
 0x169   :  { %v1673_v42 = vpop.eup %1672  ;;  %v505_v9 = vmul.f32 1.442695, %v487_v28  ;;  %v889_v14 = vmul.f32 0.0, %v1671_v36  ;;  %v716_v28 = vrot.slane %v2232_v32, 2 }
 0x16a   :  { %v893_v17 = vmul.f32 0.0, %v1673_v42  ;;  %v1675_v31 = vpop.eup %1674  ;;  %v806_v42 = vperm.slane %v2170_v53, 3 }
 0x16f   :  { %1314 = vperm.xlu1 %1637, %v593_v37   ;;  %1350 = vperm.xlu0 %1638, %v778_v38   ;;  %v407_v38 = vmul.f32 1.442695, %v390_v25  ;;  %v489_v25 = vmul.f32 %v457_v43, %v2188_v63 }
 0x170   :  { %1186 = vperm.xlu2 %1639, %v579_v34   ;;  %v834_v34 = vperm.slane %v2170_v53, 7 }
 0x171   :  { %1676 = vpow2.f32 %v407_v38  ;;  %v509_v44 = vmul.f32 1.442695, %v489_v25 }
 0x172   :  { %1678 = vpow2.f32 %v505_v9  ;;  %v445_v9 = vrot.slane %v2174_v55, 7  ;;  %v717_v55 = vrot.slane %v2232_v32, 3 }
 0x173   :  { %1680 = vpow2.f32 %v507_v20 }
 0x174   :  { %1682 = vpow2.f32 %v409_v27  ;;  %v460_v27 = vperm.slane %v445_v9, 0 }
 0x175   :  { %1684 = vpow2.f32 %v509_v44 }
 0x176   :  { %v492_v57 = vmul.f32 %v460_v27, %v2188_v63 }
 0x177   :  { %1640 = vset.pattern.permute.xlu1 %v2119_v21  ;;  %1642 = vset.pattern.permute.xlu0 %v2119_v21  ;;  %v1677_v1 = vpop.eup %1676 }
 0x178   :  { %1286 = vperm.xlu2 %1639, %v771_v39   ;;  %v785_v39 = vperm.slane %v2170_v53, 0  ;;  %v1679_v7 = vpop.eup %1678 }
 0x17a   :  { %v2150_v46 = vpop.permute.xlu2 %556 }
 0x17f   :  { %626 = vperm.xlu0 %1642, %v621_v47   ;;  %612 = vperm.xlu1 %1640, %v607_v48  }
 0x180   :  { %1641 = vset.pattern.permute.xlu2 %v2119_v21  ;;  %v2221_v21 = vmul.f32 %v2172_v54, %v2074_v8 }
 0x182   :  { %v2159_v49 = vpop.permute.xlu2 %563  ;;  %v537_v8 = vrot.slane %v2221_v21, 1  ;;  %v663_v37 = vperm.slane %v2221_v21, 0  ;;  %v538_v36 = vrot.slane %v2221_v21, 2 }
 0x184   :  { %v695_v5 = vmul.f32 %v663_v37, %v2150_v46  ;;  %v664_v6 = vperm.slane %v537_v8, 0  ;;  %v459_v37 = vperm.slane %v444_v13, 0  ;;  %v665_v13 = vperm.slane %v538_v36, 0 }
 0x186   :  { %v2258_v8 = vadd.f32 %v889_v14, %v695_v5  ;;  %v696_v43 = vmul.f32 %v664_v6, %v2159_v49  ;;  %v411_v6 = vmul.f32 1.442695, %v392_v33  ;;  %v1681_v33 = vpop.eup %1680 }
 0x187   :  { %647 = vperm.xlu0 %1642, %v642_v50   ;;  %633 = vperm.xlu1 %1640, %v628_v51  }
 0x188   :  { %619 = vperm.xlu2 %1641, %v614_v52   ;;  %v954_v49 = vmul.f32 %v1677_v1, %v2258_v8  ;;  %1686 = vpow2.f32 %v411_v6  ;;  %v719_v1 = vrot.slane %v2232_v32, 5 }
 0x189   :  { %1688 = vpow2.f32 %v511_v26  ;;  %v720_v26 = vrot.slane %v2232_v32, 6 }
 0x18a   :  { %v2178_v58 = vpop.permute.xlu2 %584  ;;  %v2277_v20 = vadd.f32 %v954_v49, %v696_v43  ;;  %v827_v43 = vperm.slane %v2170_v53, 6  ;;  %v539_v49 = vrot.slane %v2221_v21, 3 }
 0x18f   :  { %797 = vperm.xlu0 %1642, %v792_v56   ;;  %654 = vperm.xlu1 %1640, %v649_v60  }
 0x190   :  { %640 = vperm.xlu2 %1641, %v635_v62  }
 0x191   :  { %v2198_v2 = vpop.permute.xlu1 %577  ;;  %v2200_v3 = vpop.permute.xlu0 %570 }
 0x192   :  { %v2207_v15 = vpop.permute.xlu2 %598 }
 0x197   :  { %818 = vperm.xlu0 %1642, %v813_v11   ;;  %804 = vperm.xlu1 %1640, %v799_v12  }
 0x198   :  { %661 = vperm.xlu2 %1641, %v656_v16  }
 0x199   :  { %v2223_v22 = vpop.permute.xlu1 %591  ;;  %v2225_v23 = vpop.permute.xlu0 %605 }
 0x19a   :  { %v749_v0 = vpop.permute.xlu2 %748 }
 0x19f   :  { %839 = vperm.xlu0 %1642, %v834_v34   ;;  %825 = vperm.xlu1 %1640, %v820_v35  }
 0x1a0   :  { %790 = vperm.xlu2 %1641, %v785_v39  }
 0x1a1   :  { %v735_v10 = vpop.permute.xlu0 %734  ;;  %v742_v19 = vpop.permute.xlu1 %741 }
 0x1a2   :  { %v873_v18 = vmul.f32 %v841_v4, %v735_v10  ;;  %v874_v38 = vmul.f32 %v842_v30, %v742_v19  ;;  %v843_v4 = vperm.slane %v716_v28, 0  ;;  %v361_v10 = vperm.slane %v346_v61, 0 }
 0x1a3   :  { %v491_v19 = vmul.f32 %v459_v37, %v2188_v63  ;;  %v718_v28 = vrot.slane %v2232_v32, 4  ;;  %v844_v30 = vperm.slane %v717_v55, 0  ;;  %v697_v61 = vmul.f32 %v665_v13, %v2200_v3 }
 0x1a4   :  { %v2256_v46 = vadd.f32 %v893_v17, %v873_v18  ;;  %v875_v14 = vmul.f32 %v843_v4, %v749_v0  ;;  %v770_v17 = vpop.permute.xlu2 %769  ;;  %v347_v0 = vrot.slane %v2172_v54, 5  ;;  %v393_v36 = vmul.f32 %v361_v10, %v2183_v59 }
 0x1a5   :  { %v513_v3 = vmul.f32 1.442695, %v491_v19  ;;  %v845_v4 = vperm.slane %v718_v28, 0 }
 0x1a6   :  { %v958_v40 = vmul.f32 %v1675_v31, %v2256_v46  ;;  %v413_v10 = vmul.f32 1.442695, %v393_v36  ;;  %v348_v36 = vrot.slane %v2172_v54, 6 }
 0x1a7   :  { %1645 = vset.pattern.permute.xlu0 %v2139_v41  ;;  %1644 = vset.pattern.permute.xlu1 %v2139_v41  ;;  %1690 = vpow2.f32 %v513_v3  ;;  %v847_v3 = vperm.slane %v720_v26, 0 }
 0x1a8   :  { %v2269_v5 = vadd.f32 %v958_v40, %v874_v38  ;;  %811 = vperm.xlu2 %1641, %v806_v42   ;;  %v1683_v38 = vpop.eup %1682  ;;  %1692 = vpow2.f32 %v413_v10 }
 0x1a9   :  { %v756_v25 = vpop.permute.xlu0 %755  ;;  %v1018_v9 = vmul.f32 %v1683_v38, %v2277_v20  ;;  %v763_v44 = vpop.permute.xlu1 %762 }
 0x1aa   :  { %v1022_v18 = vmul.f32 %v1679_v7, %v2269_v5  ;;  %v876_v40 = vmul.f32 %v844_v30, %v756_v25  ;;  %v1685_v7 = vpop.eup %1684  ;;  %v846_v25 = vperm.slane %v719_v1, 0  ;;  %v666_v30 = vperm.slane %v539_v49, 0 }
 0x1ab   :  { %v2299_v6 = vadd.f32 %v1018_v9, %v697_v61  ;;  %v1687_v19 = vpop.eup %1686  ;;  %v540_v9 = vrot.slane %v2221_v21, 4  ;;  %v363_v49 = vperm.slane %v348_v36, 0 }
 0x1ac   :  { %v2280_v31 = vadd.f32 %v1022_v18, %v875_v14  ;;  %v515_v18 = vmul.f32 1.442695, %v492_v57  ;;  %v1689_v28 = vpop.eup %1688 }
 0x1ad   :  { %v1691_v57 = vpop.eup %1690 }
 0x1ae   :  { %v1086_v37 = vmul.f32 %v1681_v33, %v2280_v31  ;;  %v1082_v33 = vmul.f32 %v1687_v19, %v2299_v6  ;;  %1694 = vpow2.f32 %v515_v18  ;;  %v1693_v10 = vpop.eup %1692 }
 0x1af   :  { %1000 = vperm.xlu0 %1645, %v614_v52   ;;  %936 = vperm.xlu1 %1644, %v607_v48   ;;  %v362_v52 = vperm.slane %v347_v0, 0  ;;  %v877_v48 = vmul.f32 %v845_v4, %v763_v44  ;;  %v878_v0 = vmul.f32 %v846_v25, %v770_v17  ;;  %v721_v44 = vrot.slane %v2232_v32, 7 }
 0x1b0   :  { %v2294_v55 = vadd.f32 %v1086_v37, %v876_v40  ;;  %832 = vperm.xlu2 %1641, %v827_v43   ;;  %v698_v37 = vmul.f32 %v666_v30, %v2198_v2  ;;  %v349_v25 = vrot.slane %v2172_v54, 7  ;;  %v395_v30 = vmul.f32 %v363_v49, %v2183_v59 }
 0x1b1   :  { %v394_v61 = vmul.f32 %v362_v52, %v2183_v59  ;;  %v777_v40 = vpop.permute.xlu0 %776  ;;  %v784_v4 = vpop.permute.xlu1 %783  ;;  %v848_v32 = vperm.slane %v721_v44, 0  ;;  %v541_v54 = vrot.slane %v2221_v21, 5 }
 0x1b2   :  { %v2301_v13 = vpop.permute.xlu2 %966  ;;  %v1150_v14 = vmul.f32 %v1685_v7, %v2294_v55  ;;  %v2321_v1 = vadd.f32 %v1082_v33, %v698_v37  ;;  %v879_v7 = vmul.f32 %v847_v3, %v777_v40 }
 0x1b3   :  { %v415_v2 = vmul.f32 1.442695, %v394_v61  ;;  %v880_v26 = vmul.f32 %v848_v32, %v784_v4 }
 0x1b4   :  { %v2305_v27 = vadd.f32 %v1150_v14, %v877_v48  ;;  %v667_v48 = vperm.slane %v540_v9, 0  ;;  %v1146_v18 = vmul.f32 %v1693_v10, %v2321_v1  ;;  %v417_v9 = vmul.f32 1.442695, %v395_v30 }
 0x1b5   :  { %1696 = vpow2.f32 %v415_v2 }
 0x1b6   :  { %v1214_v38 = vmul.f32 %v1689_v28, %v2305_v27  ;;  %v699_v33 = vmul.f32 %v667_v48, %v2178_v58  ;;  %1698 = vpow2.f32 %v417_v9 }
 0x1b7   :  { %1100 = vperm.xlu0 %1645, %v806_v42   ;;  %972 = vperm.xlu1 %1644, %v792_v56  }
 0x1b8   :  { %1643 = vset.pattern.permute.xlu2 %v2139_v41  ;;  %v2319_v17 = vadd.f32 %v1214_v38, %v878_v0  ;;  %v1695_v41 = vpop.eup %1694  ;;  %v2342_v36 = vadd.f32 %v1146_v18, %v699_v33  ;;  %v330_v18 = vld [vmem:[#allocation6 + $0x8] sm:$0xff] }
 0x1ba   :  { %v995_v42 = vpop.permute.xlu2 %994  ;;  %v1278_v56 = vmul.f32 %v1691_v57, %v2319_v17  ;;  %v668_v57 = vperm.slane %v541_v54, 0  ;;  %v974_v54 = vmul.f32 %v2301_v13, %v2277_v20 }
 0x1bb   :  { %v1002_v52 = vmul.f32 %v995_v42, %v2269_v5  ;;  %v1697_v44 = vpop.eup %1696 }
 0x1bc   :  { %v2325_v14 = vadd.f32 %v1278_v56, %v879_v7  ;;  %v700_v7 = vmul.f32 %v668_v57, %v2223_v22  ;;  %v543_v56 = vrot.slane %v2221_v21, 7 }
 0x1bd   :  { %v1004_v19 = vsel %vm911_vm10, %v1002_v52, 0.0 }
 0x1be   :  { %v1005_v28 = vrot.slane %v1004_v19, 4  ;;  %v1342_v5 = vmul.f32 %v1695_v41, %v2325_v14  ;;  %v2363_v30 = vperm.slane %v543_v56, 0 }
 0x1bf   :  { %1192 = vperm.xlu0 %1645, %v635_v62   ;;  %1064 = vperm.xlu1 %1644, %v621_v47   ;;  %v364_v62 = vperm.slane %v349_v25, 0 }
 0x1c0   :  { %v1006_v61 = vadd.f32 %v1005_v28, %v1004_v19  ;;  %907 = vperm.xlu2 %1643, %v785_v39   ;;  %v2339_v0 = vadd.f32 %v1342_v5, %v880_v26  ;;  %v1210_v39 = vmul.f32 %v1697_v44, %v2342_v36  ;;  %v702_v53 = vmul.f32 %v2363_v30, %v2225_v23 }
 0x1c1   :  { %v902_v38 = vpop.permute.xlu1 %901  ;;  %v931_v37 = vpop.permute.xlu0 %930  ;;  %v396_v4 = vmul.f32 %v364_v62, %v2183_v59 }
 0x1c2   :  { %v1095_v40 = vpop.permute.xlu2 %1094  ;;  %v938_v58 = vmul.f32 %v931_v37, %v2256_v46  ;;  %v1007_v3 = vrot.slane %v1006_v61, 2  ;;  %v542_v46 = vrot.slane %v2221_v21, 6  ;;  %v2357_v52 = vadd.f32 %v1210_v39, %v700_v7  ;;  %v1699_v21 = vpop.eup %1698 }
 0x1c3   :  { %v419_v26 = vmul.f32 1.442695, %v396_v4  ;;  %v909_v9 = vmul.f32 %v902_v38, %v2258_v8  ;;  %v976_v39 = vsel %vm911_vm10, %v974_v54, 0.0 }
 0x1c4   :  { %v940_v47 = vsel %vm911_vm10, %v938_v58, 0.0  ;;  %v1008_v42 = vadd.f32 %v1007_v3, %v1006_v61  ;;  %v669_v28 = vperm.slane %v542_v46, 0  ;;  %v1274_v61 = vmul.f32 %v1699_v21, %v2357_v52 }
 0x1c5   :  { %v941_v2 = vrot.slane %v940_v47, 4  ;;  %1700 = vpow2.f32 %v419_v26 }
 0x1c6   :  { %v1009_v19 = vrot.slane %v1008_v42, 1  ;;  %v701_v13 = vmul.f32 %v669_v28, %v2207_v15 }
 0x1c7   :  { %v942_v49 = vadd.f32 %v941_v2, %v940_v47  ;;  %1292 = vperm.xlu0 %1645, %v827_v43   ;;  %1164 = vperm.xlu1 %1644, %v813_v11   ;;  %v2360_v43 = vld [vmem:[#allocation2 + $0x8] sm:$0xff] }
 0x1c8   :  { %1036 = vperm.xlu2 %1643, %v799_v12   ;;  %v1010_v58 = vadd.f32 %v1009_v19, %v1008_v42  ;;  %v350_v20 = vrot.slane %v2360_v43, 1  ;;  %v1276_v7 = vadd.f32 %v1274_v61, %v701_v13  ;;  %v352_v42 = vrot.slane %v2360_v43, 3 }
 0x1c9   :  { %v943_v10 = vrot.slane %v942_v49, 2  ;;  %v1031_v48 = vpop.permute.xlu1 %1030  ;;  %v1059_v22 = vpop.permute.xlu0 %1058  ;;  %v354_v19 = vrot.slane %v2360_v43, 5 }
 0x1ca   :  { %v1187_v32 = vpop.permute.xlu2 %1186  ;;  %v1066_v41 = vmul.f32 %v1059_v22, %v2280_v31  ;;  %v2369_v31 = vmul.f32 %v2360_v43, %v330_v18  ;;  %v1038_v44 = vmul.f32 %v1031_v48, %v2299_v6  ;;  %v1102_v6 = vmul.f32 %v1095_v40, %v2321_v1 }
 0x1cb   :  { %v944_v11 = vadd.f32 %v943_v10, %v942_v49  ;;  %v1194_v25 = vmul.f32 %v1187_v32, %v2305_v27  ;;  %v1701_v48 = vpop.eup %1700  ;;  %v977_v22 = vrot.slane %v976_v39, 4  ;;  %v366_v26 = vperm.slane %v350_v20, 0 }
 0x1cc   :  { %v1068_v12 = vsel %vm911_vm10, %v1066_v41, 0.0  ;;  %v544_v15 = vrot.slane %v2369_v31, 1  ;;  %v1040_v49 = vsel %vm911_vm10, %v1038_v44, 0.0  ;;  %v1104_v41 = vsel %vm911_vm10, %v1102_v6, 0.0 }
 0x1cd   :  { %v945_v5 = vrot.slane %v944_v11, 1  ;;  %v1196_v33 = vsel %vm911_vm10, %v1194_v25, 0.0  ;;  %v1069_v37 = vrot.slane %v1068_v12, 4  ;;  %v1105_v61 = vrot.slane %v1104_v41, 4 }
 0x1ce   :  { %v1197_v27 = vrot.slane %v1196_v33, 4 }
 0x1cf   :  { %v946_v62 = vadd.f32 %v945_v5, %v944_v11  ;;  %1384 = vperm.xlu0 %1645, %v656_v16   ;;  %1256 = vperm.xlu1 %1644, %v642_v50   ;;  %v1070_v47 = vadd.f32 %v1069_v37, %v1068_v12  ;;  %v365_v16 = vperm.slane %v2360_v43, 0  ;;  %v351_v50 = vrot.slane %v2360_v43, 2 }
 0x1d0   :  { %v1198_v3 = vadd.f32 %v1197_v27, %v1196_v33  ;;  %1128 = vperm.xlu2 %1643, %v628_v51   ;;  %v912_v51 = vsel %vm911_vm10, %v909_v9, 0.0  ;;  %v1041_v11 = vrot.slane %v1040_v49, 4  ;;  %v978_v33 = vadd.f32 %v977_v22, %v976_v39 }
 0x1d1   :  { %v1423_v8 = vsel %vm1402_vm11, %v946_v62, %v1010_v58  ;;  %v1123_v38 = vpop.permute.xlu1 %1122  ;;  %v1159_v57 = vpop.permute.xlu0 %1158  ;;  %v1071_v2 = vrot.slane %v1070_v47, 2  ;;  %v913_v40 = vrot.slane %v912_v51, 4  ;;  %v397_v5 = vmul.f32 %v365_v16, %v2183_v59 }
 0x1d2   :  { %v1130_v4 = vmul.f32 %v1123_v38, %v2294_v55  ;;  %v1199_v46 = vrot.slane %v1198_v3, 2  ;;  %v1166_v1 = vmul.f32 %v1159_v57, %v2342_v36  ;;  %v353_v55 = vrot.slane %v2360_v43, 4  ;;  %v1287_v12 = vpop.permute.xlu2 %1286 }
 0x1d3   :  { %v1072_v56 = vadd.f32 %v1071_v2, %v1070_v47  ;;  %v1338_v36 = vmul.f32 %v1701_v48, %v1276_v7  ;;  %v914_v9 = vadd.f32 %v913_v40, %v912_v51  ;;  %v1294_v47 = vmul.f32 %v1287_v12, %v1276_v7 }
 0x1d4   :  { %v1132_v10 = vsel %vm911_vm10, %v1130_v4, 0.0  ;;  %v1200_v21 = vadd.f32 %v1199_v46, %v1198_v3  ;;  %v1168_v27 = vsel %vm911_vm10, %v1166_v1, 0.0  ;;  %v421_v1 = vmul.f32 1.442695, %v397_v5 }
 0x1d5   :  { %v1133_v32 = vrot.slane %v1132_v10, 4  ;;  %v1073_v18 = vrot.slane %v1072_v56, 1  ;;  %v1169_v13 = vrot.slane %v1168_v27, 4  ;;  %v915_v2 = vrot.slane %v914_v9, 2 }
 0x1d6   :  { %v1201_v20 = vrot.slane %v1200_v21, 1  ;;  %v1340_v4 = vadd.f32 %v1338_v36, %v702_v53  ;;  %v1296_v23 = vsel %vm911_vm10, %v1294_v47, 0.0  ;;  %1702 = vpow2.f32 %v421_v1 }
 0x1d7   :  { %v1134_v25 = vadd.f32 %v1133_v32, %v1132_v10  ;;  %1356 = vperm.xlu1 %1644, %v834_v34   ;;  %v1074_v28 = vadd.f32 %v1073_v18, %v1072_v56  ;;  %v1170_v46 = vadd.f32 %v1169_v13, %v1168_v27  ;;  %v1297_v40 = vrot.slane %v1296_v23, 4 }
 0x1d8   :  { %1228 = vperm.xlu2 %1643, %v820_v35   ;;  %v1042_v35 = vadd.f32 %v1041_v11, %v1040_v49  ;;  %v1202_v49 = vadd.f32 %v1201_v20, %v1200_v21  ;;  %v916_v21 = vadd.f32 %v915_v2, %v914_v9 }
 0x1d9   :  { %v1135_v54 = vrot.slane %v1134_v25, 2  ;;  %v1223_v37 = vpop.permute.xlu1 %1222  ;;  %v1251_v58 = vpop.permute.xlu0 %1250  ;;  %v1425_v34 = vsel %vm1405_vm12, %v1423_v8, %v1074_v28  ;;  %v398_v8 = vmul.f32 %v366_v26, %v2183_v59  ;;  %v1171_v12 = vrot.slane %v1170_v46, 2 }
 0x1da   :  { %v1230_v62 = vmul.f32 %v1223_v37, %v2357_v52  ;;  %v1258_v44 = vmul.f32 %v1251_v58, %v2319_v17  ;;  %v979_v52 = vrot.slane %v978_v33, 2  ;;  %v1106_v17 = vadd.f32 %v1105_v61, %v1104_v41 }
 0x1db   :  { %v1136_v3 = vadd.f32 %v1135_v54, %v1134_v25  ;;  %v1043_v7 = vrot.slane %v1042_v35, 2  ;;  %v367_v58 = vperm.slane %v351_v50, 0  ;;  %v671_v50 = vperm.slane %v2369_v31, 0 }
 0x1dc   :  { %v1232_v38 = vsel %vm911_vm10, %v1230_v62, 0.0  ;;  %v1260_v57 = vsel %vm911_vm10, %v1258_v44, 0.0  ;;  %v980_v26 = vadd.f32 %v979_v52, %v978_v33  ;;  %v1107_v28 = vrot.slane %v1106_v17, 2 }
 0x1dd   :  { %v1137_v16 = vrot.slane %v1136_v3, 1  ;;  %v1233_v39 = vrot.slane %v1232_v38, 4  ;;  %v1261_v6 = vrot.slane %v1260_v57, 4  ;;  %v917_v33 = vrot.slane %v916_v21, 1 }
 0x1de   :  { %v981_v44 = vrot.slane %v980_v26, 1  ;;  %v1108_v53 = vadd.f32 %v1107_v28, %v1106_v17  ;;  %v423_v17 = vmul.f32 1.442695, %v398_v8  ;;  %v399_v24 = vmul.f32 %v367_v58, %v2183_v59 }
 0x1df   :  { %v1138_v51 = vadd.f32 %v1137_v16, %v1136_v3  ;;  %v1262_v30 = vadd.f32 %v1261_v6, %v1260_v57  ;;  %v1234_v10 = vadd.f32 %v1233_v39, %v1232_v38  ;;  %v1172_v3 = vadd.f32 %v1171_v12, %v1170_v46 }
 0x1e0   :  { %1320 = vperm.xlu2 %1643, %v649_v60   ;;  %v1044_v60 = vadd.f32 %v1043_v7, %v1042_v35  ;;  %v368_v39 = vperm.slane %v352_v42, 0  ;;  %v355_v6 = vrot.slane %v2360_v43, 6  ;;  %v918_v52 = vadd.f32 %v917_v33, %v916_v21  ;;  %v2459_v33 = vld [vmem:[%s2652_s8] ss:$0 sm:$0xff] }
 0x1e1   :  { %v1427_v56 = vsel %vm1408_vm14, %v1425_v34, %v1138_v51  ;;  %v1263_v48 = vrot.slane %v1262_v30, 2  ;;  %v1315_v22 = vpop.permute.xlu1 %1314  ;;  %v1351_v32 = vpop.permute.xlu0 %1350  ;;  %v1235_v54 = vrot.slane %v1234_v10, 2  ;;  %v1109_v7 = vrot.slane %v1108_v53, 1 }
 0x1e2   :  { %v1322_v41 = vmul.f32 %v1315_v22, %v2325_v14  ;;  %v2417_v18 = vpop.permute.xlu2 %619  ;;  %v1358_v11 = vmul.f32 %v1351_v32, %v1340_v4  ;;  %v1429_v25 = vsel %vm1411_vm13, %v1427_v56, %v1202_v49  ;;  %v1298_v14 = vadd.f32 %v1297_v40, %v1296_v23 }
 0x1e3   :  { %v1264_v45 = vadd.f32 %v1263_v48, %v1262_v30  ;;  %v1045_v35 = vrot.slane %v1044_v60, 1  ;;  %v1236_v47 = vadd.f32 %v1235_v54, %v1234_v10  ;;  %v982_v4 = vadd.f32 %v981_v44, %v980_v26  ;;  %v2435_v10 = vld [vmem:[#allocation3 + $0x8] sm:$0xff] }
 0x1e4   :  { %v1324_v36 = vsel %vm911_vm10, %v1322_v41, 0.0  ;;  %v1360_v61 = vsel %vm911_vm10, %v1358_v11, 0.0  ;;  %v1299_v57 = vrot.slane %v1298_v14, 2  ;;  %v1173_v23 = vrot.slane %v1172_v3, 1 }
 0x1e5   :  { %v1265_v5 = vrot.slane %v1264_v45, 1  ;;  %v1325_v27 = vrot.slane %v1324_v36, 4  ;;  %v1361_v37 = vrot.slane %v1360_v61, 4  ;;  %v1046_v51 = vadd.f32 %v1045_v35, %v1044_v60 }
 0x1e6   :  { %v545_v30 = vrot.slane %v2369_v31, 2  ;;  %v1237_v49 = vrot.slane %v1236_v47, 1  ;;  %v1300_v42 = vadd.f32 %v1299_v57, %v1298_v14  ;;  %v672_v48 = vperm.slane %v544_v15, 0 }
 0x1e7   :  { %v1266_v9 = vadd.f32 %v1265_v5, %v1264_v45  ;;  %v1326_v34 = vadd.f32 %v1325_v27, %v1324_v36  ;;  %v1362_v62 = vadd.f32 %v1361_v37, %v1360_v61  ;;  %v369_v8 = vperm.slane %v353_v55, 0 }
 0x1e8   :  { %1378 = vperm.xlu2 %1643, %v600_v29   ;;  %v1703_v29 = vpop.eup %1702  ;;  %v400_v22 = vmul.f32 %v368_v39, %v2183_v59  ;;  %v1403_v32 = vsel %vm1402_vm11, %v918_v52, %v982_v4  ;;  %1704 = vpow2.f32 %v423_v17  ;;  %v425_v40 = vmul.f32 1.442695, %v399_v24 }
 0x1e9   :  { %v1327_v20 = vrot.slane %v1326_v34, 2  ;;  %v1363_v13 = vrot.slane %v1362_v62, 2  ;;  %v1431_v38 = vsel %vm1414_vm15, %v1429_v25, %v1266_v9  ;;  %v1406_v41 = vsel %vm1405_vm12, %v1403_v32, %v1046_v51 }
 0x1ea   :  { %v2427_v16 = vpop.permute.xlu2 %640  ;;  %v1174_v11 = vadd.f32 %v1173_v23, %v1172_v3  ;;  %v461_v25 = vperm.slane %v2435_v10, 0  ;;  %v1110_v26 = vadd.f32 %v1109_v7, %v1108_v53  ;;  %v1238_v21 = vadd.f32 %v1237_v49, %v1236_v47 }
 0x1eb   :  { %v1328_v2 = vadd.f32 %v1327_v20, %v1326_v34  ;;  %v1364_v56 = vadd.f32 %v1363_v13, %v1362_v62  ;;  %v1301_v60 = vrot.slane %v1300_v42, 1  ;;  %v890_v36 = vmul.f32 0.0, %v1703_v29 }
 0x1ec   :  { %v370_v61 = vperm.slane %v354_v19, 0  ;;  %v1409_v54 = vsel %vm1408_vm14, %v1406_v41, %v1110_v26  ;;  %1706 = vpow2.f32 %v425_v40  ;;  %v401_v5 = vmul.f32 %v369_v8, %v2183_v59 }
 0x1ed   :  { %v1329_v46 = vrot.slane %v1328_v2, 1  ;;  %v1365_v28 = vrot.slane %v1364_v56, 1  ;;  %v427_v27 = vmul.f32 1.442695, %v400_v22  ;;  %v546_v14 = vrot.slane %v2369_v31, 3 }
 0x1ee   :  { %v1412_v58 = vsel %vm1411_vm13, %v1409_v54, %v1174_v11  ;;  %v371_v19 = vperm.slane %v355_v6, 0  ;;  %v1705_v34 = vpop.eup %1704  ;;  %v493_v44 = vmul.f32 %v461_v25, %v2188_v63  ;;  %v446_v53 = vrot.slane %v2435_v10, 1  ;;  %v1744_v6 = vld [vmem:[#allocation6] sm:$0xff] }
 0x1ef   :  { %v1330_v1 = vadd.f32 %v1329_v46, %v1328_v2  ;;  %v1366_v62 = vadd.f32 %v1365_v28, %v1364_v56  ;;  %v1415_v35 = vsel %vm1414_vm15, %v1412_v58, %v1238_v21  ;;  %v1302_v3 = vadd.f32 %v1301_v60, %v1300_v42  ;;  %v2478_v56 = vld [vmem:[#allocation9 + $0x8] sm:$0xff] }
 0x1f0   :  { %v704_v47 = vmul.f32 %v672_v48, %v2417_v18  ;;  %1708 = vpow2.f32 %v427_v27  ;;  %v429_v13 = vmul.f32 1.442695, %v401_v5  ;;  %v356_v57 = vrot.slane %v2360_v43, 7 }
 0x1f1   :  { %v613_v15 = vpop.permute.xlu1 %612  ;;  %v627_v45 = vpop.permute.xlu0 %626  ;;  %v2446_v55 = vsel %vm1417_vm1, %v1431_v38, %v1330_v1  ;;  %v402_v38 = vmul.f32 %v370_v61, %v2183_v59  ;;  %v1418_v39 = vsel %vm1417_vm1, %v1415_v35, %v1302_v3  ;;  %v1440_v52 = vmul.f32 %v1744_v6, %v2459_v33 }
 0x1f2   :  { %v703_v12 = vmul.f32 %v671_v50, %v613_v15  ;;  %v2452_v37 = vpop.permute.xlu2 %661  ;;  %v673_v50 = vperm.slane %v545_v30, 0  ;;  %v1707_v17 = vpop.eup %1706  ;;  %v547_v18 = vrot.slane %v2369_v31, 4  ;;  %v1421_v24 = vsel %vm1420_vm2, %v1418_v39, %v1366_v62 }
 0x1f3   :  { %v517_v4 = vmul.f32 1.442695, %v493_v44  ;;  %v462_v23 = vperm.slane %v446_v53, 0  ;;  %1710 = vpow2.f32 %v429_v13  ;;  %v431_v30 = vmul.f32 1.442695, %v402_v38 }
 0x1f4   :  { %v2461_v9 = vadd.f32 %v890_v36, %v703_v12  ;;  %v705_v29 = vmul.f32 %v673_v50, %v627_v45  ;;  %v403_v49 = vmul.f32 %v371_v19, %v2183_v59  ;;  %v372_v46 = vperm.slane %v356_v57, 0 }
 0x1f5   :  { %v674_v42 = vperm.slane %v546_v14, 0  ;;  %v2480_v48 = vadd.f32 %v1440_v52, %v1421_v24  ;;  %v447_v8 = vrot.slane %v2435_v10, 2  ;;  %v548_v1 = vrot.slane %v2369_v31, 5 }
 0x1f6   :  { %v955_v20 = vmul.f32 %v1705_v34, %v2461_v9  ;;  %v1709_v32 = vpop.eup %1708  ;;  %1712 = vpow2.f32 %v517_v4  ;;  %v494_v11 = vmul.f32 %v462_v23, %v2188_v63  ;;  %v2490_v26 = vmul.f32 %v2435_v10, %v2478_v56 }
 0x1f7   :  { %1714 = vpow2.f32 %v431_v30  ;;  %v433_v21 = vmul.f32 1.442695, %v403_v49  ;;  %v404_v28 = vmul.f32 %v372_v46, %v2183_v59  ;;  %v675_v15 = vperm.slane %v547_v18, 0 }
 0x1f8   :  { %v2472_v2 = vadd.f32 %v955_v20, %v704_v47  ;;  %v1444_v45 = vsel %vm147_vm0, %v2480_v48, 0.0  ;;  %v463_v60 = vperm.slane %v447_v8, 0  ;;  %v519_v54 = vmul.f32 1.442695, %v494_v11 }
 0x1f9   :  { %v634_v51 = vpop.permute.xlu1 %633  ;;  %v648_v43 = vpop.permute.xlu0 %647  ;;  %v707_v61 = vmul.f32 %v675_v15, %v2427_v16  ;;  %v448_v5 = vrot.slane %v2435_v10, 3  ;;  %v849_v14 = vperm.slane %v2490_v26, 0  ;;  %1716 = vpow2.f32 %v433_v21 }
 0x1fa   :  { %v1019_v7 = vmul.f32 %v1707_v17, %v2472_v2  ;;  %v791_v40 = vpop.permute.xlu2 %790  ;;  %v706_v41 = vmul.f32 %v674_v42, %v634_v51  ;;  %v1711_v36 = vpop.eup %1710  ;;  %v435_v59 = vmul.f32 1.442695, %v404_v28  ;;  %v676_v19 = vperm.slane %v548_v1, 0 }
 0x1fb   :  { %v549_v34 = vrot.slane %v2369_v31, 6  ;;  %v495_v44 = vmul.f32 %v463_v60, %v2188_v63  ;;  %v881_v16 = vmul.f32 %v849_v14, %v791_v40  ;;  %v722_v3 = vrot.slane %v2490_v26, 1 }
 0x1fc   :  { %v2483_v22 = vadd.f32 %v1019_v7, %v705_v29  ;;  %v1713_v58 = vpop.eup %1712  ;;  %v708_v20 = vmul.f32 %v676_v19, %v648_v43  ;;  %1718 = vpow2.f32 %v519_v54  ;;  %v464_v13 = vperm.slane %v448_v5, 0 }
 0x1fd   :  { %v1715_v35 = vpop.eup %1714  ;;  %v894_v57 = vmul.f32 0.0, %v1713_v58  ;;  %1720 = vpow2.f32 %v435_v59  ;;  %v550_v50 = vrot.slane %v2369_v31, 7  ;;  %v677_v6 = vperm.slane %v549_v34, 0 }
 0x1fe   :  { %v1083_v25 = vmul.f32 %v1709_v32, %v2483_v22  ;;  %v521_v52 = vmul.f32 1.442695, %v495_v44  ;;  %v850_v29 = vperm.slane %v722_v3, 0  ;;  %v496_v51 = vmul.f32 %v464_v13, %v2188_v63 }
 0x1ff   :  { %v1717_v18 = vpop.eup %1716  ;;  %v896_v24 = vadd.f32 %v894_v57, %v881_v16  ;;  %v449_v23 = vrot.slane %v2435_v10, 4  ;;  %v723_v30 = vrot.slane %v2490_v26, 2  ;;  %v678_v31 = vperm.slane %v550_v50, 0 }
 0x200   :  { %v2495_v12 = vadd.f32 %v1083_v25, %v706_v41  ;;  %1722 = vpow2.f32 %v521_v52  ;;  %v523_v1 = vmul.f32 1.442695, %v496_v51  ;;  %v450_v54 = vrot.slane %v2435_v10, 5 }
 0x201   :  { %1445 = vadd.xlane.f32.xlu1 %v1444_v45  ;;  %v655_v62 = vpop.permute.xlu1 %654  ;;  %v798_v47 = vpop.permute.xlu0 %797  ;;  %v710_v32 = vmul.f32 %v678_v31, %v2452_v37  ;;  %v465_v41 = vperm.slane %v449_v23, 0  ;;  %v851_v25 = vperm.slane %v723_v30, 0  ;;  %v724_v5 = vrot.slane %v2490_v26, 3 }
 0x202   :  { %v1147_v27 = vmul.f32 %v1711_v36, %v2495_v12  ;;  %v812_v39 = vpop.permute.xlu2 %811  ;;  %v709_v4 = vmul.f32 %v677_v6, %v655_v62  ;;  %v882_v43 = vmul.f32 %v850_v29, %v798_v47  ;;  %v1719_v49 = vpop.eup %1718  ;;  %1724 = vpow2.f32 %v523_v1  ;;  %v1745_v36 = vld [vmem:[#allocation15] sm:$0xf] }
 0x203   :  { %v1721_v42 = vpop.eup %1720  ;;  %v959_v8 = vmul.f32 %v1719_v49, %v896_v24  ;;  %v466_v59 = vperm.slane %v450_v54, 0  ;;  %v852_v19 = vperm.slane %v724_v5, 0  ;;  %v451_v3 = vrot.slane %v2435_v10, 6 }
 0x204   :  { %v2503_v53 = vadd.f32 %v1147_v27, %v707_v61  ;;  %v497_v61 = vmul.f32 %v1745_v36, %v465_v41  ;;  %v726_v49 = vrot.slane %v2490_v26, 5  ;;  %v727_v5 = vrot.slane %v2490_v26, 6 }
 0x205   :  { %v961_v11 = vadd.f32 %v959_v8, %v882_v43  ;;  %v884_v47 = vmul.f32 %v852_v19, %v812_v39  ;;  %v467_v57 = vperm.slane %v451_v3, 0 }
 0x206   :  { %v1211_v38 = vmul.f32 %v1715_v35, %v2503_v53  ;;  %v1723_v45 = vpop.eup %1722  ;;  %v525_v14 = vmul.f32 1.442695, %v497_v61  ;;  %v498_v35 = vmul.f32 %v1745_v36, %v466_v59 }
 0x207   :  { %v1023_v37 = vmul.f32 %v1723_v45, %v961_v11  ;;  %v499_v23 = vmul.f32 %v1745_v36, %v467_v57 }
 0x208   :  { %v2508_v17 = vadd.f32 %v1211_v38, %v708_v20  ;;  %v1725_v58 = vpop.eup %1724  ;;  %1726 = vpow2.f32 %v525_v14  ;;  %v725_v20 = vrot.slane %v2490_v26, 4  ;;  %v527_v38 = vmul.f32 1.442695, %v498_v35 }
 0x209   :  { %v805_v40 = vpop.permute.xlu1 %804  ;;  %v819_v21 = vpop.permute.xlu0 %818  ;;  %v529_v8 = vmul.f32 1.442695, %v499_v23 }
 0x20a   :  { %v1275_v7 = vmul.f32 %v1717_v18, %v2508_v17  ;;  %v883_v15 = vmul.f32 %v851_v25, %v805_v40  ;;  %v2520_v60 = vpop.permute.xlu2 %832  ;;  %v853_v6 = vperm.slane %v725_v20, 0  ;;  %1728 = vpow2.f32 %v527_v38 }
 0x20b   :  { %1730 = vpow2.f32 %v529_v8 }
 0x20c   :  { %v2514_v46 = vadd.f32 %v1275_v7, %v709_v4  ;;  %v2524_v27 = vadd.f32 %v1023_v37, %v883_v15  ;;  %v452_v7 = vrot.slane %v2435_v10, 7  ;;  %v885_v43 = vmul.f32 %v853_v6, %v819_v21 }
 0x20e   :  { %v1339_v63 = vmul.f32 %v1721_v42, %v2514_v46  ;;  %v1087_v34 = vmul.f32 %v1725_v58, %v2524_v27  ;;  %v1727_v50 = vpop.eup %1726 }
 0x210   :  { %v2518_v28 = vadd.f32 %v1339_v63, %v710_v32  ;;  %v1089_v13 = vadd.f32 %v1087_v34, %v884_v47  ;;  %v468_v32 = vperm.slane %v452_v7, 0  ;;  %v1729_v1 = vpop.eup %1728  ;;  %v855_v47 = vperm.slane %v727_v5, 0 }
 0x211   :  { %v826_v62 = vpop.permute.xlu1 %825  ;;  %v2527_v44 = vpop.permute.xlu0 %839 }
 0x212   :  { %v1151_v52 = vmul.f32 %v1727_v50, %v1089_v13  ;;  %v500_v61 = vmul.f32 %v1745_v36, %v468_v32  ;;  %v887_v23 = vmul.f32 %v855_v47, %v2520_v60 }
 0x214   :  { %v1153_v39 = vadd.f32 %v1151_v52, %v885_v43 }
 0x216   :  { %v1215_v63 = vmul.f32 %v1729_v1, %v1153_v39 }
 0x21a   :  { %v908_v16 = vpop.permute.xlu2 %907 }
 0x21b   :  { %v910_v4 = vmul.f32 %v908_v16, %v2461_v9  ;;  %v854_v9 = vperm.slane %v726_v49, 0  ;;  %v531_v16 = vmul.f32 1.442695, %v500_v61 }
 0x21d   :  { %v919_v42 = vsel %vm911_vm10, %v910_v4, 0.0  ;;  %v886_v54 = vmul.f32 %v854_v9, %v826_v62  ;;  %v1731_v62 = vpop.eup %1730  ;;  %1732 = vpow2.f32 %v531_v16 }
 0x21e   :  { %v920_v25 = vrot.slane %v919_v42, 4 }
 0x21f   :  { %v2543_v58 = vadd.f32 %v1215_v63, %v886_v54 }
 0x220   :  { %v921_v19 = vadd.f32 %v920_v25, %v919_v42 }
 0x221   :  { %v937_v18 = vpop.permute.xlu1 %936  ;;  %v1001_v29 = vpop.permute.xlu0 %1000 }
 0x222   :  { %v1037_v51 = vpop.permute.xlu2 %1036  ;;  %v939_v30 = vmul.f32 %v937_v18, %v896_v24  ;;  %v1003_v41 = vmul.f32 %v1001_v29, %v961_v11  ;;  %v922_v38 = vrot.slane %v921_v19, 2  ;;  %v1279_v18 = vmul.f32 %v1731_v62, %v2543_v58 }
 0x223   :  { %v1039_v31 = vmul.f32 %v1037_v51, %v2483_v22 }
 0x224   :  { %v947_v40 = vsel %vm911_vm10, %v939_v30, 0.0  ;;  %v1011_v11 = vsel %vm911_vm10, %v1003_v41, 0.0  ;;  %v923_v8 = vadd.f32 %v922_v38, %v921_v19 }
 0x225   :  { %v1047_v10 = vsel %vm911_vm10, %v1039_v31, 0.0  ;;  %v948_v37 = vrot.slane %v947_v40, 4  ;;  %v1012_v3 = vrot.slane %v1011_v11, 4 }
 0x226   :  { %v1048_v14 = vrot.slane %v1047_v10, 4 }
 0x227   :  { %v1013_v43 = vadd.f32 %v1012_v3, %v1011_v11 }
 0x228   :  { %v1049_v20 = vadd.f32 %v1048_v14, %v1047_v10  ;;  %v1733_v10 = vpop.eup %1732 }
 0x229   :  { %v973_v21 = vpop.permute.xlu1 %972  ;;  %v1101_v24 = vpop.permute.xlu0 %1100  ;;  %v1014_v25 = vrot.slane %v1013_v43, 2 }
 0x22a   :  { %v1129_v15 = vpop.permute.xlu2 %1128  ;;  %v975_v45 = vmul.f32 %v973_v21, %v2472_v2  ;;  %v1103_v22 = vmul.f32 %v1101_v24, %v2495_v12  ;;  %v949_v12 = vadd.f32 %v948_v37, %v947_v40  ;;  %v1050_v49 = vrot.slane %v1049_v20, 2 }
 0x22b   :  { %v1131_v34 = vmul.f32 %v1129_v15, %v1089_v13  ;;  %v728_v13 = vrot.slane %v2490_v26, 7  ;;  %v1281_v26 = vadd.f32 %v1279_v18, %v887_v23 }
 0x22c   :  { %v983_v59 = vsel %vm911_vm10, %v975_v45, 0.0  ;;  %v1111_v2 = vsel %vm911_vm10, %v1103_v22, 0.0  ;;  %v950_v7 = vrot.slane %v949_v12, 2  ;;  %v1051_v21 = vadd.f32 %v1050_v49, %v1049_v20 }
 0x22d   :  { %v984_v35 = vrot.slane %v983_v59, 4  ;;  %v1139_v57 = vsel %vm911_vm10, %v1131_v34, 0.0  ;;  %v1112_v50 = vrot.slane %v1111_v2, 4  ;;  %v924_v45 = vrot.slane %v923_v8, 1 }
 0x22e   :  { %v1140_v31 = vrot.slane %v1139_v57, 4  ;;  %v951_v63 = vadd.f32 %v950_v7, %v949_v12  ;;  %v1343_v37 = vmul.f32 %v1733_v10, %v1281_v26  ;;  %v1015_v34 = vadd.f32 %v1014_v25, %v1013_v43 }
 0x22f   :  { %v985_v36 = vadd.f32 %v984_v35, %v983_v59  ;;  %v1113_v32 = vadd.f32 %v1112_v50, %v1111_v2  ;;  %v1052_v16 = vrot.slane %v1051_v21, 1  ;;  %v925_v38 = vadd.f32 %v924_v45, %v923_v8 }
 0x230   :  { %v1141_v24 = vadd.f32 %v1140_v31, %v1139_v57  ;;  %v952_v19 = vrot.slane %v951_v63, 1 }
 0x231   :  { %v1065_v6 = vpop.permute.xlu1 %1064  ;;  %v1193_v52 = vpop.permute.xlu0 %1192  ;;  %v986_v29 = vrot.slane %v985_v36, 2  ;;  %v1114_v22 = vrot.slane %v1113_v32, 2 }
 0x232   :  { %v1229_v4 = vpop.permute.xlu2 %1228  ;;  %v1067_v51 = vmul.f32 %v1065_v6, %v2524_v27  ;;  %v1195_v9 = vmul.f32 %v1193_v52, %v1153_v39  ;;  %v856_v27 = vperm.slane %v728_v13, 0  ;;  %v1142_v12 = vrot.slane %v1141_v24, 2 }
 0x233   :  { %v1231_v30 = vmul.f32 %v1229_v4, %v2508_v17  ;;  %v987_v40 = vadd.f32 %v986_v29, %v985_v36  ;;  %v1115_v36 = vadd.f32 %v1114_v22, %v1113_v32  ;;  %v1016_v6 = vrot.slane %v1015_v34, 1 }
 0x234   :  { %v1075_v42 = vsel %vm911_vm10, %v1067_v51, 0.0  ;;  %v888_v15 = vmul.f32 %v856_v27, %v2527_v44  ;;  %v1203_v14 = vsel %vm911_vm10, %v1195_v9, 0.0  ;;  %v1053_v13 = vadd.f32 %v1052_v16, %v1051_v21 }
 0x235   :  { %v1239_v1 = vsel %vm911_vm10, %v1231_v30, 0.0  ;;  %v1076_v60 = vrot.slane %v1075_v42, 4  ;;  %v988_v5 = vrot.slane %v987_v40, 1  ;;  %v1204_v62 = vrot.slane %v1203_v14, 4 }
 0x236   :  { %v1240_v41 = vrot.slane %v1239_v1, 4  ;;  %v953_v29 = vadd.f32 %v952_v19, %v951_v63  ;;  %v2560_v4 = vadd.f32 %v1142_v12, %v1141_v24  ;;  %v1116_v23 = vrot.slane %v1115_v36, 1 }
 0x237   :  { %v1077_v2 = vadd.f32 %v1076_v60, %v1075_v42  ;;  %v989_v57 = vadd.f32 %v988_v5, %v987_v40  ;;  %v1205_v7 = vadd.f32 %v1204_v62, %v1203_v14  ;;  %v1017_v19 = vadd.f32 %v1016_v6, %v1015_v34  ;;  %v1649_v62 = vld [vmem:[%s2653_s9] ss:$0 sm:$0xff] }
 0x238   :  { %v1241_v17 = vadd.f32 %v1240_v41, %v1239_v1  ;;  %v1117_v45 = vadd.f32 %v1116_v23, %v1115_v36 }
 0x239   :  { %v1165_v61 = vpop.permute.xlu1 %1164  ;;  %v1293_v54 = vpop.permute.xlu0 %1292  ;;  %v1078_v52 = vrot.slane %v1077_v2, 2  ;;  %v1404_v42 = vsel %vm1402_vm11, %v925_v38, %v989_v57 }
 0x23a   :  { %v1321_v11 = vpop.permute.xlu2 %1320  ;;  %v1167_v39 = vmul.f32 %v1165_v61, %v2503_v53  ;;  %v1295_v59 = vmul.f32 %v1293_v54, %v2514_v46  ;;  %v1242_v35 = vrot.slane %v1241_v17, 2  ;;  %v1345_v53 = vadd.f32 %v1343_v37, %v888_v15 }
 0x23b   :  { %v1323_v47 = vmul.f32 %v1321_v11, %v1281_v26  ;;  %v1079_v41 = vadd.f32 %v1078_v52, %v1077_v2  ;;  %v1407_v21 = vsel %vm1405_vm12, %v1404_v42, %v1053_v13  ;;  %v1746_v13 = vld [vmem:[#allocation9] sm:$0xff] }
 0x23c   :  { %v1175_v44 = vsel %vm911_vm10, %v1167_v39, 0.0  ;;  %v1303_v3 = vsel %vm911_vm10, %v1295_v59, 0.0  ;;  %v1243_v46 = vadd.f32 %v1242_v35, %v1241_v17  ;;  %v1410_v14 = vsel %vm1408_vm14, %v1407_v21, %v1117_v45 }
 0x23d   :  { %v1176_v20 = vrot.slane %v1175_v44, 4  ;;  %v1304_v50 = vrot.slane %v1303_v3, 4  ;;  %v1331_v43 = vsel %vm911_vm10, %v1323_v47, 0.0  ;;  %v1080_v54 = vrot.slane %v1079_v41, 1 }
 0x23e   :  { %v1244_v40 = vrot.slane %v1243_v46, 1  ;;  %v1332_v63 = vrot.slane %v1331_v43, 4 }
 0x23f   :  { %v1177_v18 = vadd.f32 %v1176_v20, %v1175_v44  ;;  %v1305_v51 = vadd.f32 %v1304_v50, %v1303_v3  ;;  %v1144_v44 = vrot.slane %v2560_v4, 1  ;;  %v1081_v20 = vadd.f32 %v1080_v54, %v1079_v41 }
 0x240   :  { %v1245_v11 = vadd.f32 %v1244_v40, %v1243_v46  ;;  %v1333_v39 = vadd.f32 %v1332_v63, %v1331_v43 }
 0x241   :  { %v1178_v30 = vrot.slane %v1177_v18, 2  ;;  %v1257_v49 = vpop.permute.xlu1 %1256  ;;  %v1385_v31 = vpop.permute.xlu0 %1384  ;;  %v1306_v8 = vrot.slane %v1305_v51, 2 }
 0x242   :  { %v1379_v32 = vpop.permute.xlu2 %1378  ;;  %v1259_v1 = vmul.f32 %v1257_v49, %v2543_v58  ;;  %v1387_v26 = vmul.f32 %v1385_v31, %v1345_v53  ;;  %v1206_v58 = vrot.slane %v1205_v7, 2  ;;  %v1334_v53 = vrot.slane %v1333_v39, 2 }
 0x243   :  { %v1179_v9 = vadd.f32 %v1178_v30, %v1177_v18  ;;  %v1386_v27 = vmul.f32 %v1379_v32, %v2339_v0  ;;  %v1307_v25 = vadd.f32 %v1306_v8, %v1305_v51  ;;  %v1424_v18 = vsel %vm1402_vm11, %v953_v29, %v1017_v19 }
 0x244   :  { %v1267_v60 = vsel %vm911_vm10, %v1259_v1, 0.0  ;;  %v1395_v10 = vsel %vm911_vm10, %v1387_v26, 0.0  ;;  %v1207_v50 = vadd.f32 %v1206_v58, %v1205_v7  ;;  %v1510_v51 = vmul.f32 %v1746_v13, %v1649_v62 }
 0x245   :  { %v1180_v24 = vrot.slane %v1179_v9, 1  ;;  %v1388_v17 = vsel %vm911_vm10, %v1386_v27, 0.0  ;;  %v1268_v15 = vrot.slane %v1267_v60, 4  ;;  %v1308_v22 = vrot.slane %v1307_v25, 1 }
 0x246   :  { %v1389_v61 = vrot.slane %v1388_v17, 4  ;;  %v1396_v0 = vrot.slane %v1395_v10, 4  ;;  %v1426_v23 = vsel %vm1405_vm12, %v1424_v18, %v1081_v20  ;;  %v1145_v31 = vadd.f32 %v1144_v44, %v2560_v4  ;;  %v1747_v4 = vld [vmem:[#allocation6 + $0x8] sm:$0xff] }
 0x247   :  { %v1181_v37 = vadd.f32 %v1180_v24, %v1179_v9  ;;  %v1269_v5 = vadd.f32 %v1268_v15, %v1267_v60  ;;  %v1309_v35 = vadd.f32 %v1308_v22, %v1307_v25  ;;  %v1208_v42 = vrot.slane %v1207_v50, 1 }
 0x248   :  { %v1390_v59 = vadd.f32 %v1389_v61, %v1388_v17  ;;  %v1397_v57 = vadd.f32 %v1396_v0, %v1395_v10  ;;  %v1335_v8 = vadd.f32 %v1334_v53, %v1333_v39  ;;  %v1428_v26 = vsel %vm1408_vm14, %v1426_v23, %v1145_v31 }
 0x249   :  { %v1270_v2 = vrot.slane %v1269_v5, 2  ;;  %v1357_v16 = vpop.permute.xlu1 %1356  ;;  %v1413_v12 = vsel %vm1411_vm13, %v1410_v14, %v1181_v37  ;;  %v1209_v27 = vadd.f32 %v1208_v42, %v1207_v50  ;;  %v1441_v10 = vmul.f32 %v1747_v4, %v2459_v33 }
 0x24a   :  { %v1391_v3 = vrot.slane %v1390_v59, 2  ;;  %v1359_v36 = vmul.f32 %v1357_v16, %v2518_v28  ;;  %v1416_v47 = vsel %vm1414_vm15, %v1413_v12, %v1245_v11  ;;  %v1398_v30 = vrot.slane %v1397_v57, 2 }
 0x24b   :  { %v1271_v38 = vadd.f32 %v1270_v2, %v1269_v5  ;;  %v1419_v34 = vsel %vm1417_vm1, %v1416_v47, %v1309_v35  ;;  %v1336_v63 = vrot.slane %v1335_v8, 1  ;;  %v1430_v21 = vsel %vm1411_vm13, %v1428_v26, %v1209_v27  ;;  %v1652_v26 = vld [vmem:[%s2655_s11] ss:$0 sm:$0xff] }
 0x24c   :  { %v1392_v6 = vadd.f32 %v1391_v3, %v1390_v59  ;;  %v1367_v46 = vsel %vm911_vm10, %v1359_v36, 0.0  ;;  %v1399_v40 = vadd.f32 %v1398_v30, %v1397_v57  ;;  %v1961_v58 = vmov 32.0  }
 0x24d   :  { %v1368_v52 = vrot.slane %v1367_v46, 4  ;;  %v1272_v43 = vrot.slane %v1271_v38, 1  ;;  %v1337_v15 = vadd.f32 %v1336_v63, %v1335_v8  ;;  %1734 = vrcp.f32 %v1961_v58 }
 0x24e   :  { %v1393_v28 = vrot.slane %v1392_v6, 1  ;;  %v1400_v24 = vrot.slane %v1399_v40, 1  ;;  %v1511_v5 = vmul.f32 %v1649_v62, %v2478_v56 }
 0x24f   :  { %v1369_v49 = vadd.f32 %v1368_v52, %v1367_v46  ;;  %v1273_v29 = vadd.f32 %v1272_v43, %v1271_v38 }
 0x250   :  { %v1394_v7 = vadd.f32 %v1393_v28, %v1392_v6  ;;  %v1401_v54 = vadd.f32 %v1400_v24, %v1399_v40 }
 0x251   :  { %v1370_v32 = vrot.slane %v1369_v49, 2 }
 0x252   :  { %v1435_v1 = vsel %vm1420_vm2, %v2446_v55, %v1394_v7  ;;  %v1432_v55 = vsel %vm1414_vm15, %v1430_v21, %v1273_v29  ;;  %v1650_v7 = vld [vmem:[%s2654_s10] ss:$0 sm:$0xff] }
 0x253   :  { %v1371_v41 = vadd.f32 %v1370_v32, %v1369_v49  ;;  %v1512_v9 = vadd.f32 %v1510_v51, %v1435_v1  ;;  %v1434_v61 = vsel %vm1417_vm1, %v1432_v55, %v1337_v15  ;;  %v1735_v0 = vpop.eup %1734 }
 0x254   :  { %v1436_v33 = vsel %vm1420_vm2, %v1434_v61, %v1401_v54  ;;  %v1451_v11 = vmul.f32 32.0, %v1735_v0  ;;  %vm1455_vm3 = vweird.f32 %v1735_v0  ;;  %v1651_v54 = vld [vmem:[%s2656_s12] ss:$0 sm:$0xff]  ;;  %s1962_s12 = smov [#allocation17]  }
 0x255   :  { %v1372_v25 = vrot.slane %v1371_v41, 1  ;;  %v1514_v60 = vsel %vm147_vm0, %v1512_v9, 0.0  ;;  %v1513_v14 = vadd.f32 %v1511_v5, %v1436_v33  ;;  %s1574_s24 = sshll.u32 %s1962_s12, 4  ;;  %s1575_s24 = int_to_ptr.vmem [resolvable:$true] %s1574_s24 }
 0x256   :  { %1515 = vadd.xlane.f32.xlu0 %v1514_v60  ;;  %v1452_v59 = vsub.f32 1.0, %v1451_v11 }
 0x257   :  { %v1373_v17 = vadd.f32 %v1372_v25, %v1371_v41  ;;  %v1517_v39 = vsel %vm147_vm0, %v1513_v14, 0.0 }
 0x258   :  { %v1453_v19 = vmul.f32 %v1735_v0, %v1452_v59 }
 0x259   :  { %v1422_v45 = vsel %vm1420_vm2, %v1419_v34, %v1373_v17 }
 0x25a   :  { %v1443_v22 = vadd.f32 %v1441_v10, %v1422_v45  ;;  %v1454_v35 = vadd.f32 %v1735_v0, %v1453_v19 }
 0x25c   :  { %v1447_v37 = vsel %vm147_vm0, %v1443_v22, 0.0  ;;  %v1456_v2 = vsel %vm1455_vm3, %v1735_v0, %v1454_v35 }
 0x25d   :  { %1448 = vadd.xlane.f32.xlu2 %v1447_v37 }
 0x265   :  { %1518 = vadd.xlane.f32.xlu2 %v1517_v39 }
 0x274   :  { %v1446_v16 = vpop.xlane.xlu1 %1445 }
 0x275   :  { %v1457_v12 = vmul.f32 %v1456_v2, %v1446_v16 }
 0x277   :  { %v1459_v44 = vsub.f32 %v2480_v48, %v1457_v12 }
 0x279   :  { %v1461_v3 = vmul.f32 %v1459_v44, %v1459_v44 }
 0x27b   :  { %v1463_v56 = vsel %vm147_vm0, %v1461_v3, 0.0 }
 0x27c   :  { %1464 = vadd.xlane.f32.xlu1 %v1463_v56 }
 0x2c9   :  { %v1516_v36 = vpop.xlane.xlu0 %1515 }
 0x2ca   :  { %v1520_v62 = vmul.f32 %v1516_v36, %v1456_v2 }
 0x2cc   :  { %v2598_v47 = vsub.f32 %v1512_v9, %v1520_v62 }
 0x2ce   :  { %v1524_v20 = vmul.f32 %v2598_v47, %v2598_v47 }
 0x2d0   :  { %v1449_v38 = vpop.xlane.xlu2 %1448  ;;  %v1526_v57 = vsel %vm147_vm0, %v1524_v20, 0.0 }
 0x2d1   :  { %v1458_v34 = vmul.f32 %v1456_v2, %v1449_v38  ;;  %1527 = vadd.xlane.f32.xlu0 %v1526_v57 }
 0x2d3   :  { %v2603_v50 = vsub.f32 %v1443_v22, %v1458_v34 }
 0x2d5   :  { %v1462_v48 = vmul.f32 %v2603_v50, %v2603_v50 }
 0x2d7   :  { %v1466_v53 = vsel %vm147_vm0, %v1462_v48, 0.0 }
 0x2d8   :  { %1467 = vadd.xlane.f32.xlu2 %v1466_v53  ;;  %v1519_v6 = vpop.xlane.xlu2 %1518 }
 0x2d9   :  { %v1521_v46 = vmul.f32 %v1519_v6, %v1456_v2 }
 0x2db   :  { %v2608_v52 = vsub.f32 %v1513_v14, %v1521_v46  ;;  %v1653_v14 = vld [vmem:[%s2657_s13] ss:$0 sm:$0xff] }
 0x2dd   :  { %v1525_v18 = vmul.f32 %v2608_v52, %v2608_v52 }
 0x2df   :  { %v1529_v28 = vsel %vm147_vm0, %v1525_v18, 0.0 }
 0x2e0   :  { %1530 = vadd.xlane.f32.xlu1 %v1529_v28 }
 0x2ef   :  { %v1465_v13 = vpop.xlane.xlu1 %1464 }
 0x2f0   :  { %v1469_v51 = vmul.f32 %v1465_v13, %v1456_v2 }
 0x2f2   :  { %v1471_v23 = vadd.f32 1e-05, %v1469_v51 }
 0x2f4   :  { %1736 = vrsqrt.f32 %v1471_v23  ;;  %vm1479_vm5 = vweird.f32 %v1471_v23 }
 0x2fa   :  { %v1737_v43 = vpop.eup %1736 }
 0x2fb   :  { %v1474_v30 = vmul.f32 %v1737_v43, %v1471_v23  ;;  %vm1480_vm4 = vweird.f32 %v1737_v43 }
 0x2fc   :  { %vm1481_vm6 = vmor %vm1479_vm5, %vm1480_vm4 }
 0x2fd   :  { %v1475_v49 = vmul.f32 %v1737_v43, %v1474_v30 }
 0x2ff   :  { %v1476_v31 = vmul.f32 0.5, %v1475_v49 }
 0x301   :  { %v1477_v42 = vsub.f32 1.5, %v1476_v31 }
 0x303   :  { %v1478_v8 = vmul.f32 %v1737_v43, %v1477_v42 }
 0x305   :  { %v1482_v32 = vsel %vm1481_vm6, %v1737_v43, %v1478_v8 }
 0x306   :  { %v1493_v1 = vmul.f32 %v1482_v32, %v1459_v44 }
 0x308   :  { %v1498_v29 = vmul.f32 %v1650_v7, %v1493_v1 }
 0x30a   :  { %v1503_v40 = vadd.f32 %v1652_v26, %v1498_v29 }
 0x30c   :  { %1505 = vst.msk [vmem:[#allocation17] sm:$0xff] %vm147_vm0, %v1503_v40 }
 0x344   :  { %v1528_v41 = vpop.xlane.xlu0 %1527 }
 0x345   :  { %v1532_v9 = vmul.f32 %v1528_v41, %v1456_v2 }
 0x347   :  { %v1534_v27 = vadd.f32 1e-05, %v1532_v9 }
 0x349   :  { %1738 = vrsqrt.f32 %v1534_v27  ;;  %vm1542_vm8 = vweird.f32 %v1534_v27 }
 0x34b   :  { %v1468_v63 = vpop.xlane.xlu2 %1467 }
 0x34c   :  { %v1470_v25 = vmul.f32 %v1468_v63, %v1456_v2 }
 0x34e   :  { %v1472_v60 = vadd.f32 1e-05, %v1470_v25 }
 0x34f   :  { %v1739_v4 = vpop.eup %1738 }
 0x350   :  { %v1537_v10 = vmul.f32 %v1739_v4, %v1534_v27  ;;  %1740 = vrsqrt.f32 %v1472_v60  ;;  %vm1543_vm7 = vweird.f32 %v1739_v4  ;;  %vm1489_vm11 = vweird.f32 %v1472_v60 }
 0x351   :  { %vm1544_vm9 = vmor %vm1542_vm8, %vm1543_vm7 }
 0x352   :  { %v1538_v21 = vmul.f32 %v1739_v4, %v1537_v10 }
 0x353   :  { %v1531_v24 = vpop.xlane.xlu1 %1530 }
 0x354   :  { %v1539_v17 = vmul.f32 0.5, %v1538_v21  ;;  %v1533_v55 = vmul.f32 %v1531_v24, %v1456_v2 }
 0x356   :  { %v1741_v15 = vpop.eup %1740  ;;  %v1540_v45 = vsub.f32 1.5, %v1539_v17  ;;  %v1535_v58 = vadd.f32 1e-05, %v1533_v55 }
 0x357   :  { %v1484_v22 = vmul.f32 %v1741_v15, %v1472_v60  ;;  %vm1490_vm10 = vweird.f32 %v1741_v15 }
 0x358   :  { %v1541_v61 = vmul.f32 %v1739_v4, %v1540_v45  ;;  %1742 = vrsqrt.f32 %v1535_v58  ;;  %vm1491_vm12 = vmor %vm1489_vm11, %vm1490_vm10  ;;  %vm1552_vm14 = vweird.f32 %v1535_v58 }
 0x359   :  { %v1485_v37 = vmul.f32 %v1741_v15, %v1484_v22 }
 0x35a   :  { %v1545_v5 = vsel %vm1544_vm9, %v1739_v4, %v1541_v61 }
 0x35b   :  { %v1556_v33 = vmul.f32 %v1545_v5, %v2598_v47  ;;  %v1486_v0 = vmul.f32 0.5, %v1485_v37 }
 0x35d   :  { %v1561_v11 = vmul.f32 %v1651_v54, %v1556_v33  ;;  %v1487_v39 = vsub.f32 1.5, %v1486_v0 }
 0x35e   :  { %v1743_v59 = vpop.eup %1742 }
 0x35f   :  { %v1488_v19 = vmul.f32 %v1741_v15, %v1487_v39  ;;  %v1547_v35 = vmul.f32 %v1743_v59, %v1535_v58  ;;  %v1566_v2 = vadd.f32 %v1653_v14, %v1561_v11  ;;  %vm1553_vm13 = vweird.f32 %v1743_v59 }
 0x360   :  { %vm1554_vm15 = vmor %vm1552_vm14, %vm1553_vm13 }
 0x361   :  { %v1492_v16 = vsel %vm1491_vm12, %v1741_v15, %v1488_v19  ;;  %v1548_v12 = vmul.f32 %v1743_v59, %v1547_v35  ;;  %1568 = vst.msk [vmem:[#allocation18] sm:$0xff] %vm147_vm0, %v1566_v2 }
 0x362   :  { %v1494_v44 = vmul.f32 %v1492_v16, %v2603_v50 }
 0x363   :  { %v1549_v3 = vmul.f32 0.5, %v1548_v12 }
 0x364   :  { %v1499_v56 = vmul.f32 %v1650_v7, %v1494_v44 }
 0x365   :  { %v1550_v36 = vsub.f32 1.5, %v1549_v3 }
 0x366   :  { %v1504_v62 = vadd.f32 %v1652_v26, %v1499_v56 }
 0x367   :  { %v1551_v47 = vmul.f32 %v1743_v59, %v1550_v36 }
 0x368   :  { %1506 = vst.msk [vmem:[#allocation17 + $0x8] sm:$0xff] %vm147_vm0, %v1504_v62 }
 0x369   :  { %v1555_v20 = vsel %vm1554_vm15, %v1743_v59, %v1551_v47  ;;  %1582 = dma.vmem_to_hbm [thread:$0]  %s1575_s24, 256, %s1577_s25, [#allocation8], %s1953_s26, %s1953_s26, %s1954_s27  }
 0x36a   :  { %v1557_v38 = vmul.f32 %v1555_v20, %v2608_v52 }
 0x36c   :  { %v1562_v57 = vmul.f32 %v1651_v54, %v1557_v38 }
 0x36e   :  { %v1567_v34 = vadd.f32 %v1653_v14, %v1562_v57 }
 0x370   :  { %1569 = vst.msk [vmem:[#allocation18 + $0x8] sm:$0xff] %vm147_vm0, %v1567_v34 }
 0x371   :  { %1595 = dma.vmem_to_hbm [thread:$0]  %s1588_s14, 256, %s1590_s16, [#allocation19], %s1953_s26, %s1953_s26, %s1954_s27  }
 0x372   :  { %1948 = dma.done.wait [#allocation8], 256  }
 0x373   :  { %1949 = vsyncadd [#allocation8], 4294967040 }
 0x374   :  { %1950 = dma.done.wait [#allocation19], 256  }
 0x375   :  { %1951 = vsyncadd [#allocation19], 4294967040 }
 0x376   :  { %1604 = vsyncpa [#allocation7], 1 }
 0x377   :  { %1605 = vsyncpa [#allocation10], 1 }
 0x378   :  { %1606 = vsyncpa [#allocation13], 1 }
 0x379   :  { %1607 = vsyncpa [#allocation16], 1 }
 0x37a   :  { %1608 = vsyncpa [#allocation8], 1 }
 0x37b   :  { %1609 = vsyncpa [#allocation19], 1 }

</bundles_post_ra>
